<compile_context>
chip_gen: v6e
topology: v6e:2x2x1
jax: 0.10.0
libtpu: 0.0.40
codegen_flags: <defaults>
</compile_context>

<pallas_src>
import math
import jax
import jax.numpy as jnp
from jax.experimental import pallas as pl

# ---- model hyper-params (small, consistent with the module: hidden % 8 == 0) ----
HIDDEN = 32
HEAD = 8
HEAD_SIZE = HIDDEN // HEAD          # 4
BATCH = 2
SEQ = 8
BH = BATCH * HEAD                   # 16 — fused (batch, head) batch dim
PACK = 128                          # lane-dense packed width for [q | k | v | pad]
QKV_OUT = 3 * HEAD_SIZE             # 12 — per-head fused projection output width


def mhatt_kernel(x_ref, w_in_ref, b_in_ref, w_mo_ref, b_mo_ref, o_ref):
    """Whole MHA forward in one invocation.

    x_ref    : (BATCH, SEQ, PACK)       packed activations [q | k | v | 0]
    w_in_ref : (HEAD, PACK, QKV_OUT)    per-head fused Q/K/V projection (Q pre-scaled)
    b_in_ref : (HEAD, 1, QKV_OUT)       per-head fused biases (bq pre-scaled)
    w_mo_ref : (HEAD, HEAD_SIZE, PACK)  per-head slice of W_merge, padded to 128 lanes
    b_mo_ref : (1, PACK)                merge bias, padded to 128 lanes
    o_ref    : (BATCH, SEQ, PACK)       lane-dense output (first HIDDEN lanes valid)
    """
    x = x_ref[...]                                                     # (B, S, 128)

    # Fuse (batch, head) into one leading batch axis using only leading-dim
    # broadcasts / reshapes (no minor-dim relayouts, no XLU traffic).
    xb = jnp.broadcast_to(x[:, None], (BATCH, HEAD, SEQ, PACK)).reshape(BH, SEQ, PACK)
    w_in = jnp.broadcast_to(w_in_ref[...][None],
                            (BATCH, HEAD, PACK, QKV_OUT)).reshape(BH, PACK, QKV_OUT)
    b_in = jnp.broadcast_to(b_in_ref[...][None],
                            (BATCH, HEAD, 1, QKV_OUT)).reshape(BH, 1, QKV_OUT)

    # Fused Q/K/V projection: one head-batched, 128-wide contraction on the MXU.
    qkv = jnp.einsum("nsi,nio->nso", xb, w_in,
                     preferred_element_type=jnp.float32) + b_in        # (BH, SEQ, 12)
    q = qkv[..., 0:HEAD_SIZE]                 # (BH, SEQ, 4) — 1/sqrt(d_k) pre-folded
    k = qkv[..., HEAD_SIZE:2 * HEAD_SIZE]
    v = qkv[..., 2 * HEAD_SIZE:3 * HEAD_SIZE]

    # Scaled dot-product attention for all (batch, head) pairs at once.
    s = jnp.einsum("nqd,nkd->nqk", q, k,
                   preferred_element_type=jnp.float32)                 # (BH, SEQ, SEQ)
    # TODO(synk): optional attention mask (masked_fill with -65504.0) not wired in (mask=None path).
    s_max = jnp.max(s, axis=-1, keepdims=True)
    p = jnp.exp(s - s_max)                                             # EUP
    att = p * pl.reciprocal(jnp.sum(p, axis=-1, keepdims=True), approx=True)
    # Dropout: eval-mode identity.

    ctx = jnp.einsum("nqk,nkd->nqd", att, v,
                     preferred_element_type=jnp.float32)               # (BH, SEQ, 4)

    # Merge projection accumulated per head through W_merge (no lane concat).
    w_mo = jnp.broadcast_to(w_mo_ref[...][None],
                            (BATCH, HEAD, HEAD_SIZE, PACK)).reshape(BH, HEAD_SIZE, PACK)
    per_head = jnp.einsum("nqd,ndo->nqo", ctx, w_mo,
                          preferred_element_type=jnp.float32)          # (BH, SEQ, 128)
    merged = jnp.sum(per_head.reshape(BATCH, HEAD, SEQ, PACK), axis=1) + b_mo_ref[...]
    o_ref[...] = merged.astype(o_ref.dtype)                            # lane-dense store


def pack_params(params):
    """One-time host-side repacking of the module weights for the kernel."""
    scale = 1.0 / math.sqrt(HEAD_SIZE)

    def per_head(w):  # (HIDDEN, HIDDEN) -> (HEAD, HIDDEN, HEAD_SIZE)
        return w.reshape(HIDDEN, HEAD, HEAD_SIZE).transpose(1, 0, 2)

    # Input lanes: [q (0:32) | k (32:64) | v (64:96) | zero pad (96:128)].
    w_in = jnp.zeros((HEAD, PACK, QKV_OUT), jnp.float32)
    w_in = w_in.at[:, 0 * HIDDEN:1 * HIDDEN, 0:HEAD_SIZE].set(per_head(params["wq"] * scale))
    w_in = w_in.at[:, 1 * HIDDEN:2 * HIDDEN, HEAD_SIZE:2 * HEAD_SIZE].set(per_head(params["wk"]))
    w_in = w_in.at[:, 2 * HIDDEN:3 * HIDDEN, 2 * HEAD_SIZE:3 * HEAD_SIZE].set(per_head(params["wv"]))

    b_in = jnp.concatenate([
        (params["bq"] * scale).reshape(HEAD, 1, HEAD_SIZE),
        params["bk"].reshape(HEAD, 1, HEAD_SIZE),
        params["bv"].reshape(HEAD, 1, HEAD_SIZE),
    ], axis=-1)                                                         # (HEAD, 1, 12)

    w_mo = jnp.zeros((HEAD, HEAD_SIZE, PACK), jnp.float32)
    w_mo = w_mo.at[:, :, :HIDDEN].set(params["wm"].reshape(HEAD, HEAD_SIZE, HIDDEN))
    b_mo = jnp.zeros((1, PACK), jnp.float32).at[:, :HIDDEN].set(params["bm"])

    return {"w_in": w_in, "b_in": b_in, "w_mo": w_mo, "b_mo": b_mo}


@jax.jit
def mhatt_forward(v, k, q, packed):
    """v, k, q: (BATCH, SEQ, HIDDEN) float32.  packed: output of pack_params."""
    b, n, hd = q.shape
    assert (b, n, hd) == (BATCH, SEQ, HIDDEN)
    # Layout plumbing only: present one lane-dense (128-wide) activation slab.
    x = jnp.concatenate(
        [q, k, v, jnp.zeros((b, n, PACK - 3 * HIDDEN), q.dtype)], axis=-1)  # (B, S, 128)

    out = pl.pallas_call(
        mhatt_kernel,
        out_shape=jax.ShapeDtypeStruct((BATCH, SEQ, PACK), jnp.float32),
    )(x, packed["w_in"], packed["b_in"], packed["w_mo"], packed["b_mo"])
    return out[..., :HIDDEN]


def mhatt_reference(v, k, q, params):
    """Plain-JAX reference matching the PyTorch forward (mask=None, eval)."""
    b, n, _ = q.shape

    def proj(x, w, bias):
        return x @ w + bias[0]

    V = proj(v, params["wv"], params["bv"]).reshape(b, n, HEAD, HEAD_SIZE).transpose(0, 2, 1, 3)
    K = proj(k, params["wk"], params["bk"]).reshape(b, n, HEAD, HEAD_SIZE).transpose(0, 2, 1, 3)
    Q = proj(q, params["wq"], params["bq"]).reshape(b, n, HEAD, HEAD_SIZE).transpose(0, 2, 1, 3)

    scores = jnp.einsum("bhqd,bhkd->bhqk", Q, K) / math.sqrt(HEAD_SIZE)
    att = jax.nn.softmax(scores, axis=-1)
    out = jnp.einsum("bhqk,bhkd->bhqd", att, V)
    out = out.transpose(0, 2, 1, 3).reshape(b, n, HIDDEN)
    return proj(out, params["wm"], params["bm"])


def init_params(key):
    ks = jax.random.split(key, 8)
    bound = 1.0 / math.sqrt(HIDDEN)

    def w(k):  # (in, out)
        return jax.random.uniform(k, (HIDDEN, HIDDEN), jnp.float32, -bound, bound)

    def bvec(k):  # (1, out)
        return jax.random.uniform(k, (1, HIDDEN), jnp.float32, -bound, bound)

    return {
        "wv": w(ks[0]), "bv": bvec(ks[1]),
        "wk": w(ks[2]), "bk": bvec(ks[3]),
        "wq": w(ks[4]), "bq": bvec(ks[5]),
        "wm": w(ks[6]), "bm": bvec(ks[7]),
    }


if __name__ == "__main__":
    key = jax.random.PRNGKey(0)
    kp, kv, kk, kq = jax.random.split(key, 4)

    params = init_params(kp)
    packed = pack_params(params)
    v = jax.random.normal(kv, (BATCH, SEQ, HIDDEN), jnp.float32)
    k = jax.random.normal(kk, (BATCH, SEQ, HIDDEN), jnp.float32)
    q = jax.random.normal(kq, (BATCH, SEQ, HIDDEN), jnp.float32)

    out = jax.block_until_ready(mhatt_forward(v, k, q, packed))
    ref = mhatt_reference(v, k, q, params)

    assert out.shape == (BATCH, SEQ, HIDDEN)
    # Tolerance accounts for the EUP approximate reciprocal in the softmax denominator.
    assert jnp.allclose(out, ref, atol=2e-3, rtol=2e-3), "mismatch vs reference"

    print("KERNEL_OK")
</pallas_src>

<mosaic_0001>
module attributes {stable_mosaic.version = 11 : i64} {
  func.func @mhatt_kernel(%arg0: memref<2x8x128xf32, #tpu.memory_space<vmem>>, %arg1: memref<8x128x12xf32, #tpu.memory_space<vmem>>, %arg2: memref<8x1x12xf32, #tpu.memory_space<vmem>>, %arg3: memref<8x4x128xf32, #tpu.memory_space<vmem>>, %arg4: memref<1x128xf32, #tpu.memory_space<vmem>>, %arg5: memref<2x8x128xf32, #tpu.memory_space<vmem>>) attributes {dimension_semantics = [], scalar_prefetch = 0 : i64, scratch_operands = 0 : i64, tpu.core_type = #tpu.core_type<tc>} {
    %c0 = arith.constant 0 : index
    %c0_0 = arith.constant 0 : index
    %c0_1 = arith.constant 0 : index
    %0 = vector.load %arg0[%c0, %c0_0, %c0_1] : memref<2x8x128xf32, #tpu.memory_space<vmem>>, vector<2x8x128xf32>
    %1 = vector.shape_cast %0 : vector<2x8x128xf32> to vector<2x1x8x128xf32>
    %2 = vector.shape_cast %1 : vector<2x1x8x128xf32> to vector<2x1x8x128xf32>
    %3 = vector.broadcast %2 : vector<2x1x8x128xf32> to vector<2x8x8x128xf32>
    %4 = vector.shape_cast %3 : vector<2x8x8x128xf32> to vector<16x8x128xf32>
    %c0_2 = arith.constant 0 : index
    %c0_3 = arith.constant 0 : index
    %c0_4 = arith.constant 0 : index
    %5 = vector.load %arg1[%c0_2, %c0_3, %c0_4] : memref<8x128x12xf32, #tpu.memory_space<vmem>>, vector<8x128x12xf32>
    %6 = vector.shape_cast %5 : vector<8x128x12xf32> to vector<1x8x128x12xf32>
    %7 = vector.shape_cast %6 : vector<1x8x128x12xf32> to vector<1x8x128x12xf32>
    %8 = vector.broadcast %7 : vector<1x8x128x12xf32> to vector<2x8x128x12xf32>
    %9 = vector.shape_cast %8 : vector<2x8x128x12xf32> to vector<16x128x12xf32>
    %c0_5 = arith.constant 0 : index
    %c0_6 = arith.constant 0 : index
    %c0_7 = arith.constant 0 : index
    %10 = vector.load %arg2[%c0_5, %c0_6, %c0_7] : memref<8x1x12xf32, #tpu.memory_space<vmem>>, vector<8x1x12xf32>
    %11 = vector.shape_cast %10 : vector<8x1x12xf32> to vector<1x8x1x12xf32>
    %12 = vector.shape_cast %11 : vector<1x8x1x12xf32> to vector<1x8x1x12xf32>
    %13 = vector.broadcast %12 : vector<1x8x1x12xf32> to vector<2x8x1x12xf32>
    %14 = vector.shape_cast %13 : vector<2x8x1x12xf32> to vector<16x1x12xf32>
    "tpu.trace_start"() <{level = 10 : i32, message = "nsi,nio->nso"}> : () -> ()
    %cst = arith.constant dense<0.000000e+00> : vector<16x8x12xf32>
    %15 = tpu.matmul %4, %9, %cst {dimension_numbers = #tpu.dot_dimension_numbers<[2], [1], [1], [2], [0, 0, 0, 1, 1, 2], [0], [0]>} : vector<16x8x128xf32>, vector<16x128x12xf32>, vector<16x8x12xf32> -> vector<16x8x12xf32>
    "tpu.trace_stop"() : () -> ()
    %16 = vector.broadcast %14 : vector<16x1x12xf32> to vector<16x8x12xf32>
    %17 = arith.addf %15, %16 : vector<16x8x12xf32>
    %18 = vector.extract_strided_slice %17 {offsets = [0, 0, 0], sizes = [16, 8, 4], strides = [1, 1, 1]} : vector<16x8x12xf32> to vector<16x8x4xf32>
    %19 = vector.extract_strided_slice %17 {offsets = [0, 0, 4], sizes = [16, 8, 4], strides = [1, 1, 1]} : vector<16x8x12xf32> to vector<16x8x4xf32>
    %20 = vector.extract_strided_slice %17 {offsets = [0, 0, 8], sizes = [16, 8, 4], strides = [1, 1, 1]} : vector<16x8x12xf32> to vector<16x8x4xf32>
    "tpu.trace_start"() <{level = 10 : i32, message = "nqd,nkd->nqk"}> : () -> ()
    %cst_8 = arith.constant dense<0.000000e+00> : vector<16x8x8xf32>
    %21 = tpu.matmul %18, %19, %cst_8 {dimension_numbers = #tpu.dot_dimension_numbers<[2], [2], [1], [1], [0, 0, 0, 1, 1, 1], [0], [0]>} : vector<16x8x4xf32>, vector<16x8x4xf32>, vector<16x8x8xf32> -> vector<16x8x8xf32>
    "tpu.trace_stop"() : () -> ()
    %cst_9 = arith.constant dense<0xFF800000> : vector<16x8xf32>
    %22 = vector.multi_reduction <maximumf>, %21, %cst_9 [2] : vector<16x8x8xf32> to vector<16x8xf32>
    %23 = vector.shape_cast %22 : vector<16x8xf32> to vector<16x8x1xf32>
    %24 = vector.broadcast %23 : vector<16x8x1xf32> to vector<16x8x8xf32>
    %25 = arith.subf %21, %24 : vector<16x8x8xf32>
    %26 = math.exp %25 : vector<16x8x8xf32>
    %cst_10 = arith.constant dense<0.000000e+00> : vector<16x8xf32>
    %27 = vector.multi_reduction <add>, %26, %cst_10 [2] : vector<16x8x8xf32> to vector<16x8xf32>
    %28 = vector.shape_cast %27 : vector<16x8xf32> to vector<16x8x1xf32>
    %29 = tpu.reciprocal %28 {approx = true} : vector<16x8x1xf32> -> vector<16x8x1xf32>
    %30 = vector.broadcast %29 : vector<16x8x1xf32> to vector<16x8x8xf32>
    %31 = arith.mulf %26, %30 : vector<16x8x8xf32>
    "tpu.trace_start"() <{level = 10 : i32, message = "nqk,nkd->nqd"}> : () -> ()
    %cst_11 = arith.constant dense<0.000000e+00> : vector<16x8x4xf32>
    %32 = tpu.matmul %31, %20, %cst_11 {dimension_numbers = #tpu.dot_dimension_numbers<[2], [1], [1], [2], [0, 0, 0, 1, 1, 2], [0], [0]>} : vector<16x8x8xf32>, vector<16x8x4xf32>, vector<16x8x4xf32> -> vector<16x8x4xf32>
    "tpu.trace_stop"() : () -> ()
    %c0_12 = arith.constant 0 : index
    %c0_13 = arith.constant 0 : index
    %c0_14 = arith.constant 0 : index
    %33 = vector.load %arg3[%c0_12, %c0_13, %c0_14] : memref<8x4x128xf32, #tpu.memory_space<vmem>>, vector<8x4x128xf32>
    %34 = vector.shape_cast %33 : vector<8x4x128xf32> to vector<1x8x4x128xf32>
    %35 = vector.shape_cast %34 : vector<1x8x4x128xf32> to vector<1x8x4x128xf32>
    %36 = vector.broadcast %35 : vector<1x8x4x128xf32> to vector<2x8x4x128xf32>
    %37 = vector.shape_cast %36 : vector<2x8x4x128xf32> to vector<16x4x128xf32>
    "tpu.trace_start"() <{level = 10 : i32, message = "nqd,ndo->nqo"}> : () -> ()
    %cst_15 = arith.constant dense<0.000000e+00> : vector<16x8x128xf32>
    %38 = tpu.matmul %32, %37, %cst_15 {dimension_numbers = #tpu.dot_dimension_numbers<[2], [1], [1], [2], [0, 0, 0, 1, 1, 2], [0], [0]>} : vector<16x8x4xf32>, vector<16x4x128xf32>, vector<16x8x128xf32> -> vector<16x8x128xf32>
    "tpu.trace_stop"() : () -> ()
    %39 = vector.shape_cast %38 : vector<16x8x128xf32> to vector<2x8x8x128xf32>
    %cst_16 = arith.constant dense<0.000000e+00> : vector<2x8x128xf32>
    %40 = vector.multi_reduction <add>, %39, %cst_16 [1] : vector<2x8x8x128xf32> to vector<2x8x128xf32>
    %c0_17 = arith.constant 0 : index
    %c0_18 = arith.constant 0 : index
    %41 = vector.load %arg4[%c0_17, %c0_18] : memref<1x128xf32, #tpu.memory_space<vmem>>, vector<1x128xf32>
    %42 = vector.shape_cast %41 : vector<1x128xf32> to vector<1x1x128xf32>
    %43 = vector.broadcast %42 : vector<1x1x128xf32> to vector<2x8x128xf32>
    %44 = arith.addf %40, %43 : vector<2x8x128xf32>
    %c0_19 = arith.constant 0 : index
    %c0_20 = arith.constant 0 : index
    %c0_21 = arith.constant 0 : index
    %45 = vector.load %arg5[%c0_19, %c0_20, %c0_21] : memref<2x8x128xf32, #tpu.memory_space<vmem>>, vector<2x8x128xf32>
    tpu.vector_store %arg5[%c0_19, %c0_20, %c0_21], %44 {strides = array<i32>} : memref<2x8x128xf32, #tpu.memory_space<vmem>>, vector<2x8x128xf32>,
    return
  }
}

</mosaic_0001>

<bundles_post_ra>
// kernel: mhatt_forward.1
= control target key start
LH: loop header
LB: loop body
LE: loop exit
PB: predicated region body
PF: predicated region fallthrough
CT: control target
= control target key end

     0   :  { %v6545_v2 = vmov 0.0   ;;  %vm6546_vm0 = vmmov 0   ;;  %s8358_s0 = inlined_call_operand.vmem [shape: f32[2,8,128], index: 0, kind: input, shape index: {}]   ;;  %s8359_s1 = inlined_call_operand.vmem [shape: f32[8,128,12], index: 1, kind: input, shape index: {}]   ;;  %s8360_s2 = inlined_call_operand.vmem [shape: f32[8,1,12], index: 2, kind: input, shape index: {}]   ;;  %s8361_s3 = inlined_call_operand.vmem [shape: f32[8,4,128], index: 3, kind: input, shape index: {}]   ;;  %s8362_s4 = inlined_call_operand.vmem [shape: f32[1,128], index: 4, kind: input, shape index: {}]   ;;  %s8363_s5 = inlined_call_operand.hbm [shape: f32[2,8,128], index: 5, kind: output, shape index: {}]  }
   0x1   :  { %v6585_v0 = vld [vmem:[%s8359_s1 + $0x78] sm:$0xff]  ;;  %5652 = vmatprep.subr.mxu0 %v6545_v2  ;;  %5687 = vmatprep.subr.mxu1 %v6545_v2  ;;  %v6597_v3 = vld [vmem:[%s8359_s1 + $0x70] sm:$0xff]  ;;  %v6611_v5 = vld [vmem:[%s8359_s1 + $0x68] sm:$0xff] }
   0x2   :  { %v6590_v1 = vld [vmem:[%s8359_s1 + $0xf8] sm:$0xff]  ;;  %v6602_v4 = vld [vmem:[%s8359_s1 + $0xf0] sm:$0xff]  ;;  %5653 = vmatpush3.msra.mxu0 %v6585_v0  ;;  %v6616_v6 = vld [vmem:[%s8359_s1 + $0xe8] sm:$0xff]  ;;  %5684 = vmatprep.mubr.msk.f32.mxu0 %vm6546_vm0, %v6545_v2 }
   0x3   :  { %5688 = vmatpush3.msra.mxu1 %v6590_v1  ;;  %5654 = vmatprep.subr.mxu0 %v6545_v2  ;;  %v6625_v7 = vld [vmem:[%s8359_s1 + $0x60] sm:$0xff]  ;;  %v6639_v9 = vld [vmem:[%s8359_s1 + $0x58] sm:$0xff]  ;;  %v6653_v11 = vld [vmem:[%s8359_s1 + $0x50] sm:$0xff] }
   0x4   :  { %5689 = vmatprep.subr.mxu1 %v6545_v2  ;;  %5655 = vmatpush3.msra.mxu0 %v6597_v3  ;;  %v6630_v8 = vld [vmem:[%s8359_s1 + $0xe0] sm:$0xff]  ;;  %v6644_v10 = vld [vmem:[%s8359_s1 + $0xd8] sm:$0xff]  ;;  %v6658_v12 = vld [vmem:[%s8359_s1 + $0xd0] sm:$0xff] }
   0x5   :  { %5690 = vmatpush3.msra.mxu1 %v6602_v4  ;;  %5656 = vmatprep.subr.mxu0 %v6545_v2  ;;  %v6667_v13 = vld [vmem:[%s8359_s1 + $0x48] sm:$0xff]  ;;  %v6681_v15 = vld [vmem:[%s8359_s1 + $0x40] sm:$0xff]  ;;  %v6695_v17 = vld [vmem:[%s8359_s1 + $0x38] sm:$0xff] }
   0x6   :  { %5691 = vmatprep.subr.mxu1 %v6545_v2  ;;  %5657 = vmatpush3.msra.mxu0 %v6611_v5  ;;  %v6672_v14 = vld [vmem:[%s8359_s1 + $0xc8] sm:$0xff]  ;;  %v6686_v16 = vld [vmem:[%s8359_s1 + $0xc0] sm:$0xff]  ;;  %v6700_v18 = vld [vmem:[%s8359_s1 + $0xb8] sm:$0xff] }
   0x7   :  { %5692 = vmatpush3.msra.mxu1 %v6616_v6  ;;  %5658 = vmatprep.subr.mxu0 %v6545_v2  ;;  %v6709_v19 = vld [vmem:[%s8359_s1 + $0x30] sm:$0xff]  ;;  %v6723_v21 = vld [vmem:[%s8359_s1 + $0x28] sm:$0xff]  ;;  %v6737_v23 = vld [vmem:[%s8359_s1 + $0x20] sm:$0xff] }
   0x8   :  { %5693 = vmatprep.subr.mxu1 %v6545_v2  ;;  %5659 = vmatpush3.msra.mxu0 %v6625_v7  ;;  %v6714_v20 = vld [vmem:[%s8359_s1 + $0xb0] sm:$0xff]  ;;  %v6728_v22 = vld [vmem:[%s8359_s1 + $0xa8] sm:$0xff]  ;;  %v6742_v24 = vld [vmem:[%s8359_s1 + $0xa0] sm:$0xff] }
   0x9   :  { %5694 = vmatpush3.msra.mxu1 %v6630_v8  ;;  %5660 = vmatprep.subr.mxu0 %v6545_v2  ;;  %v6751_v25 = vld [vmem:[%s8359_s1 + $0x18] sm:$0xff]  ;;  %v6765_v27 = vld [vmem:[%s8359_s1 + $0x10] sm:$0xff]  ;;  %v6779_v29 = vld [vmem:[%s8359_s1 + $0x8] sm:$0xff] }
   0xa   :  { %5695 = vmatprep.subr.mxu1 %v6545_v2  ;;  %5661 = vmatpush3.msra.mxu0 %v6639_v9  ;;  %v6756_v26 = vld [vmem:[%s8359_s1 + $0x98] sm:$0xff]  ;;  %v6770_v28 = vld [vmem:[%s8359_s1 + $0x90] sm:$0xff]  ;;  %v6784_v30 = vld [vmem:[%s8359_s1 + $0x88] sm:$0xff] }
   0xb   :  { %5696 = vmatpush3.msra.mxu1 %v6644_v10  ;;  %5662 = vmatprep.subr.mxu0 %v6545_v2  ;;  %v6793_v31 = vld [vmem:[%s8359_s1] sm:$0xff]  ;;  %v6818_v34 = vld [vmem:[%s8359_s1 + $0x178] sm:$0xff]  ;;  %v6832_v36 = vld [vmem:[%s8359_s1 + $0x170] sm:$0xff] }
   0xc   :  { %5697 = vmatprep.subr.mxu1 %v6545_v2  ;;  %5663 = vmatpush3.msra.mxu0 %v6653_v11  ;;  %v6800_v32 = vld [vmem:[%s8359_s1 + $0x80] sm:$0xff]  ;;  %v6823_v35 = vld [vmem:[%s8359_s1 + $0x1f8] sm:$0xff]  ;;  %v6837_v37 = vld [vmem:[%s8359_s1 + $0x1f0] sm:$0xff] }
   0xd   :  { %5698 = vmatpush3.msra.mxu1 %v6658_v12  ;;  %5664 = vmatprep.subr.mxu0 %v6545_v2  ;;  %v6807_v33 = vld [vmem:[%s8358_s0] sm:$0xff]  ;;  %v6846_v38 = vld [vmem:[%s8359_s1 + $0x168] sm:$0xff]  ;;  %v6874_v42 = vld [vmem:[%s8359_s1 + $0x158] sm:$0xff] }
   0xe   :  { %5699 = vmatprep.subr.mxu1 %v6545_v2  ;;  %5665 = vmatpush3.msra.mxu0 %v6667_v13  ;;  %v6851_v39 = vld [vmem:[%s8359_s1 + $0x1e8] sm:$0xff]  ;;  %v6860_v40 = vld [vmem:[%s8359_s1 + $0x160] sm:$0xff]  ;;  %v6879_v43 = vld [vmem:[%s8359_s1 + $0x1d8] sm:$0xff] }
   0xf   :  { %5700 = vmatpush3.msra.mxu1 %v6672_v14  ;;  %5666 = vmatprep.subr.mxu0 %v6545_v2  ;;  %v6865_v41 = vld [vmem:[%s8359_s1 + $0x1e0] sm:$0xff]  ;;  %v6888_v44 = vld [vmem:[%s8359_s1 + $0x150] sm:$0xff] }
  0x10   :  { %5701 = vmatprep.subr.mxu1 %v6545_v2  ;;  %5667 = vmatpush3.msra.mxu0 %v6681_v15  ;;  %v6893_v45 = vld [vmem:[%s8359_s1 + $0x1d0] sm:$0xff] }
  0x11   :  { %5702 = vmatpush3.msra.mxu1 %v6686_v16  ;;  %5668 = vmatprep.subr.mxu0 %v6545_v2 }
  0x12   :  { %5703 = vmatprep.subr.mxu1 %v6545_v2  ;;  %5669 = vmatpush3.msra.mxu0 %v6695_v17 }
  0x13   :  { %5704 = vmatpush3.msra.mxu1 %v6700_v18  ;;  %5670 = vmatprep.subr.mxu0 %v6545_v2 }
  0x14   :  { %5705 = vmatprep.subr.mxu1 %v6545_v2  ;;  %5671 = vmatpush3.msra.mxu0 %v6709_v19 }
  0x15   :  { %5706 = vmatpush3.msra.mxu1 %v6714_v20  ;;  %5672 = vmatprep.subr.mxu0 %v6545_v2 }
  0x16   :  { %5707 = vmatprep.subr.mxu1 %v6545_v2  ;;  %5673 = vmatpush3.msra.mxu0 %v6723_v21 }
  0x17   :  { %5708 = vmatpush3.msra.mxu1 %v6728_v22  ;;  %5674 = vmatprep.subr.mxu0 %v6545_v2 }
  0x18   :  { %5709 = vmatprep.subr.mxu1 %v6545_v2  ;;  %5675 = vmatpush3.msra.mxu0 %v6737_v23 }
  0x19   :  { %5710 = vmatpush3.msra.mxu1 %v6742_v24  ;;  %5676 = vmatprep.subr.mxu0 %v6545_v2 }
  0x1a   :  { %5711 = vmatprep.subr.mxu1 %v6545_v2  ;;  %5677 = vmatpush3.msra.mxu0 %v6751_v25 }
  0x1b   :  { %5712 = vmatpush3.msra.mxu1 %v6756_v26  ;;  %5678 = vmatprep.subr.mxu0 %v6545_v2 }
  0x1c   :  { %5713 = vmatprep.subr.mxu1 %v6545_v2  ;;  %5679 = vmatpush3.msra.mxu0 %v6765_v27 }
  0x1d   :  { %5714 = vmatpush3.msra.mxu1 %v6770_v28  ;;  %5680 = vmatprep.subr.mxu0 %v6545_v2 }
  0x1e   :  { %5715 = vmatprep.subr.mxu1 %v6545_v2  ;;  %5681 = vmatpush3.msra.mxu0 %v6779_v29 }
  0x1f   :  { %5716 = vmatpush3.msra.mxu1 %v6784_v30  ;;  %5682 = vmatprep.subr.mxu0 %v6545_v2 }
  0x20   :  { %5717 = vmatprep.subr.mxu1 %v6545_v2  ;;  %5683 = vmatpush3.msra.mxu0 %v6793_v31 }
  0x21   :  { %5718 = vmatpush3.msra.mxu1 %v6800_v32  ;;  %5719 = vmatprep.mubr.msk.f32.mxu1 %vm6546_vm0, %v6545_v2 }
  0x22   :  { %5685 = vmatmul.mubr.f32.vlgmr.msra.gmra.mxu0 %v6807_v33  ;;  %5720 = vmatmul.mubr.f32.vlgmr.msra.gmra.mxu1 %v6807_v33 }
  0x23   :  { %5722 = vmatprep.subr.mxu0 %v6545_v2  ;;  %5757 = vmatprep.subr.mxu1 %v6545_v2 }
  0x24   :  { %5723 = vmatpush3.msra.mxu0 %v6818_v34  ;;  %5758 = vmatpush3.msra.mxu1 %v6823_v35 }
  0x25   :  { %5724 = vmatprep.subr.mxu0 %v6545_v2  ;;  %5759 = vmatprep.subr.mxu1 %v6545_v2 }
  0x26   :  { %5725 = vmatpush3.msra.mxu0 %v6832_v36  ;;  %5760 = vmatpush3.msra.mxu1 %v6837_v37 }
  0x27   :  { %5726 = vmatprep.subr.mxu0 %v6545_v2  ;;  %5761 = vmatprep.subr.mxu1 %v6545_v2 }
  0x28   :  { %5727 = vmatpush3.msra.mxu0 %v6846_v38  ;;  %5762 = vmatpush3.msra.mxu1 %v6851_v39 }
  0x29   :  { %5728 = vmatprep.subr.mxu0 %v6545_v2  ;;  %5763 = vmatprep.subr.mxu1 %v6545_v2 }
  0x2a   :  { %5729 = vmatpush3.msra.mxu0 %v6860_v40  ;;  %5764 = vmatpush3.msra.mxu1 %v6865_v41 }
  0x2b   :  { %5730 = vmatprep.subr.mxu0 %v6545_v2  ;;  %5765 = vmatprep.subr.mxu1 %v6545_v2 }
  0x2c   :  { %10 = vsyncpa [#allocation3], 0  ;;  %5731 = vmatpush3.msra.mxu0 %v6874_v42  ;;  %5766 = vmatpush3.msra.mxu1 %v6879_v43  ;;  %v6902_v46 = vld [vmem:[%s8359_s1 + $0x148] sm:$0xff]  ;;  %v6916_v48 = vld [vmem:[%s8359_s1 + $0x140] sm:$0xff]  ;;  %s6547_s30 = smov 124   ;;  %vm1330_vm1 = vcmask 31744  }
  0x2d   :  { %5732 = vmatprep.subr.mxu0 %v6545_v2  ;;  %5767 = vmatprep.subr.mxu1 %v6545_v2  ;;  %v6907_v47 = vld [vmem:[%s8359_s1 + $0x1c8] sm:$0xff]  ;;  %v6921_v49 = vld [vmem:[%s8359_s1 + $0x1c0] sm:$0xff]  ;;  %v6930_v50 = vld [vmem:[%s8359_s1 + $0x138] sm:$0xff]  ;;  %vm2560_vm2 = vcmask 64512   ;;  %vm3964_vm3 = vcmask 1043456  }
  0x2e   :  { %5733 = vmatpush3.msra.mxu0 %v6888_v44  ;;  %5768 = vmatpush3.msra.mxu1 %v6893_v45  ;;  %v6935_v51 = vld [vmem:[%s8359_s1 + $0x1b8] sm:$0xff]  ;;  %v6944_v52 = vld [vmem:[%s8359_s1 + $0x130] sm:$0xff]  ;;  %v6958_v54 = vld [vmem:[%s8359_s1 + $0x128] sm:$0xff] }
  0x2f   :  { %5734 = vmatprep.subr.mxu0 %v6545_v2  ;;  %5769 = vmatprep.subr.mxu1 %v6545_v2  ;;  %v6949_v53 = vld [vmem:[%s8359_s1 + $0x1b0] sm:$0xff]  ;;  %v6963_v55 = vld [vmem:[%s8359_s1 + $0x1a8] sm:$0xff]  ;;  %v6972_v56 = vld [vmem:[%s8359_s1 + $0x120] sm:$0xff] }
  0x30   :  { %5735 = vmatpush3.msra.mxu0 %v6902_v46  ;;  %5770 = vmatpush3.msra.mxu1 %v6907_v47  ;;  %v6977_v57 = vld [vmem:[%s8359_s1 + $0x1a0] sm:$0xff]  ;;  %v6986_v58 = vld [vmem:[%s8359_s1 + $0x118] sm:$0xff]  ;;  %v7000_v60 = vld [vmem:[%s8359_s1 + $0x110] sm:$0xff] }
  0x31   :  { %5736 = vmatprep.subr.mxu0 %v6545_v2  ;;  %5771 = vmatprep.subr.mxu1 %v6545_v2  ;;  %8430 = vst [vmem:[#allocation5_spill] sm:$0xff] %v6986_v58  ;;  %v6991_v59 = vld [vmem:[%s8359_s1 + $0x198] sm:$0xff]  ;;  %8432 = vst [vmem:[#allocation7_spill] sm:$0xff] %v7000_v60  ;;  %v7005_v61 = vld [vmem:[%s8359_s1 + $0x190] sm:$0xff] }
  0x32   :  { %5737 = vmatpush3.msra.mxu0 %v6916_v48  ;;  %5772 = vmatpush3.msra.mxu1 %v6921_v49  ;;  %8431 = vst [vmem:[#allocation6_spill] sm:$0xff] %v6991_v59  ;;  %8433 = vst [vmem:[#allocation8_spill] sm:$0xff] %v7005_v61  ;;  %v7014_v62 = vld [vmem:[%s8359_s1 + $0x108] sm:$0xff] }
  0x33   :  { %5738 = vmatprep.subr.mxu0 %v6545_v2  ;;  %5773 = vmatprep.subr.mxu1 %v6545_v2  ;;  %8434 = vst [vmem:[#allocation9_spill] sm:$0xff] %v7014_v62  ;;  %v7019_v63 = vld [vmem:[%s8359_s1 + $0x188] sm:$0xff] }
  0x34   :  { %5739 = vmatpush3.msra.mxu0 %v6930_v50  ;;  %5774 = vmatpush3.msra.mxu1 %v6935_v51  ;;  %8435 = vst [vmem:[#allocation10_spill] sm:$0xff] %v7019_v63 }
  0x35   :  { %5740 = vmatprep.subr.mxu0 %v6545_v2  ;;  %5775 = vmatprep.subr.mxu1 %v6545_v2 }
  0x36   :  { %5741 = vmatpush3.msra.mxu0 %v6944_v52  ;;  %5776 = vmatpush3.msra.mxu1 %v6949_v53 }
  0x37   :  { %5742 = vmatprep.subr.mxu0 %v6545_v2  ;;  %5777 = vmatprep.subr.mxu1 %v6545_v2 }
  0x38   :  { %5743 = vmatpush3.msra.mxu0 %v6958_v54  ;;  %5778 = vmatpush3.msra.mxu1 %v6963_v55 }
  0x39   :  { %5744 = vmatprep.subr.mxu0 %v6545_v2  ;;  %5779 = vmatprep.subr.mxu1 %v6545_v2 }
  0x3a   :  { %5745 = vmatpush3.msra.mxu0 %v6972_v56  ;;  %5780 = vmatpush3.msra.mxu1 %v6977_v57 }
  0x3b   :  { %5746 = vmatprep.subr.mxu0 %v6545_v2  ;;  %5781 = vmatprep.subr.mxu1 %v6545_v2 }
  0x3c   :  { %5747 = vmatpush3.msra.mxu0 %v6986_v58  ;;  %5782 = vmatpush3.msra.mxu1 %v6991_v59  ;;  %v7028_v59 = vld [vmem:[%s8359_s1 + $0x100] sm:$0xff] }
  0x3d   :  { %5748 = vmatprep.subr.mxu0 %v6545_v2  ;;  %5783 = vmatprep.subr.mxu1 %v6545_v2  ;;  %8436 = vst [vmem:[#allocation11_spill] sm:$0xff] %v7028_v59  ;;  %v7035_v58 = vld [vmem:[%s8359_s1 + $0x180] sm:$0xff] }
  0x3e   :  { %5749 = vmatpush3.msra.mxu0 %v7000_v60  ;;  %5784 = vmatpush3.msra.mxu1 %v7005_v61  ;;  %8437 = vst [vmem:[#allocation12_spill] sm:$0xff] %v7035_v58  ;;  %v7076_v61 = vld [vmem:[%s8359_s1 + $0x268] sm:$0xff] }
  0x3f   :  { %5750 = vmatprep.subr.mxu0 %v6545_v2  ;;  %5785 = vmatprep.subr.mxu1 %v6545_v2  ;;  %8442 = vst [vmem:[#allocation17_spill] sm:$0xff] %v7076_v61  ;;  %v7081_v60 = vld [vmem:[%s8359_s1 + $0x2e8] sm:$0xff] }
  0x40   :  { %5751 = vmatpush3.msra.mxu0 %v7014_v62  ;;  %5786 = vmatpush3.msra.mxu1 %v7019_v63  ;;  %v7048_v63 = vld [vmem:[%s8359_s1 + $0x278] sm:$0xff]  ;;  %8443 = vst [vmem:[#allocation18_spill] sm:$0xff] %v7081_v60 }
  0x41   :  { %5752 = vmatprep.subr.mxu0 %v6545_v2  ;;  %5787 = vmatprep.subr.mxu1 %v6545_v2  ;;  %8438 = vst [vmem:[#allocation13_spill] sm:$0xff] %v7048_v63  ;;  %v7053_v62 = vld [vmem:[%s8359_s1 + $0x2f8] sm:$0xff] }
  0x42   :  { %5753 = vmatpush3.msra.mxu0 %v7028_v59  ;;  %5754 = vmatprep.mubr.msk.f32.mxu0 %vm6546_vm0, %v6545_v2  ;;  %8439 = vst [vmem:[#allocation14_spill] sm:$0xff] %v7053_v62  ;;  %v7067_v59 = vld [vmem:[%s8359_s1 + $0x2f0] sm:$0xff] }
  0x43   :  { %5788 = vmatpush3.msra.mxu1 %v7035_v58  ;;  %5789 = vmatprep.mubr.msk.f32.mxu1 %vm6546_vm0, %v6545_v2  ;;  %v7062_v58 = vld [vmem:[%s8359_s1 + $0x270] sm:$0xff]  ;;  %8441 = vst [vmem:[#allocation16_spill] sm:$0xff] %v7067_v59 }
  0x44   :  { %5755 = vmatmul.mubr.f32.vlgmr.msra.gmra.mxu0 %v6807_v33  ;;  %5790 = vmatmul.mubr.f32.vlgmr.msra.gmra.mxu1 %v6807_v33  ;;  %8440 = vst [vmem:[#allocation15_spill] sm:$0xff] %v7062_v58 }
  0x45   :  { %5792 = vmatprep.subr.mxu0 %v6545_v2  ;;  %5827 = vmatprep.subr.mxu1 %v6545_v2 }
  0x46   :  { %5793 = vmatpush3.msra.mxu0 %v7048_v63  ;;  %5828 = vmatpush3.msra.mxu1 %v7053_v62  ;;  %v7090_v62 = vld [vmem:[%s8359_s1 + $0x260] sm:$0xff] }
  0x47   :  { %5794 = vmatprep.subr.mxu0 %v6545_v2  ;;  %5829 = vmatprep.subr.mxu1 %v6545_v2  ;;  %8444 = vst [vmem:[#allocation19_spill] sm:$0xff] %v7090_v62  ;;  %v7095_v63 = vld [vmem:[%s8359_s1 + $0x2e0] sm:$0xff] }
  0x48   :  { %5795 = vmatpush3.msra.mxu0 %v7062_v58  ;;  %5830 = vmatpush3.msra.mxu1 %v7067_v59  ;;  %8445 = vst [vmem:[#allocation20_spill] sm:$0xff] %v7095_v63  ;;  %v7104_v59 = vld [vmem:[%s8359_s1 + $0x258] sm:$0xff] }
  0x49   :  { %5796 = vmatprep.subr.mxu0 %v6545_v2  ;;  %5831 = vmatprep.subr.mxu1 %v6545_v2  ;;  %8446 = vst [vmem:[#allocation21_spill] sm:$0xff] %v7104_v59  ;;  %v7109_v58 = vld [vmem:[%s8359_s1 + $0x2d8] sm:$0xff] }
  0x4a   :  { %5797 = vmatpush3.msra.mxu0 %v7076_v61  ;;  %5832 = vmatpush3.msra.mxu1 %v7081_v60  ;;  %8447 = vst [vmem:[#allocation22_spill] sm:$0xff] %v7109_v58  ;;  %v7118_v60 = vld [vmem:[%s8359_s1 + $0x250] sm:$0xff] }
  0x4b   :  { %5798 = vmatprep.subr.mxu0 %v6545_v2  ;;  %5833 = vmatprep.subr.mxu1 %v6545_v2  ;;  %8448 = vst [vmem:[#allocation23_spill] sm:$0xff] %v7118_v60  ;;  %v7123_v61 = vld [vmem:[%s8359_s1 + $0x2d0] sm:$0xff] }
  0x4c   :  { %5799 = vmatpush3.msra.mxu0 %v7090_v62  ;;  %5834 = vmatpush3.msra.mxu1 %v7095_v63  ;;  %8449 = vst [vmem:[#allocation24_spill] sm:$0xff] %v7123_v61  ;;  %v7132_v63 = vld [vmem:[%s8359_s1 + $0x248] sm:$0xff] }
  0x4d   :  { %5800 = vmatprep.subr.mxu0 %v6545_v2  ;;  %5835 = vmatprep.subr.mxu1 %v6545_v2  ;;  %8450 = vst [vmem:[#allocation25_spill] sm:$0xff] %v7132_v63  ;;  %v7137_v62 = vld [vmem:[%s8359_s1 + $0x2c8] sm:$0xff] }
  0x4e   :  { %5801 = vmatpush3.msra.mxu0 %v7104_v59  ;;  %5836 = vmatpush3.msra.mxu1 %v7109_v58  ;;  %8451 = vst [vmem:[#allocation26_spill] sm:$0xff] %v7137_v62  ;;  %v7146_v58 = vld [vmem:[%s8359_s1 + $0x240] sm:$0xff] }
  0x4f   :  { %5802 = vmatprep.subr.mxu0 %v6545_v2  ;;  %5837 = vmatprep.subr.mxu1 %v6545_v2  ;;  %8452 = vst [vmem:[#allocation27_spill] sm:$0xff] %v7146_v58  ;;  %v7151_v59 = vld [vmem:[%s8359_s1 + $0x2c0] sm:$0xff] }
  0x50   :  { %5803 = vmatpush3.msra.mxu0 %v7118_v60  ;;  %5838 = vmatpush3.msra.mxu1 %v7123_v61  ;;  %8453 = vst [vmem:[#allocation28_spill] sm:$0xff] %v7151_v59  ;;  %v7160_v61 = vld [vmem:[%s8359_s1 + $0x238] sm:$0xff] }
  0x51   :  { %5804 = vmatprep.subr.mxu0 %v6545_v2  ;;  %5839 = vmatprep.subr.mxu1 %v6545_v2  ;;  %8454 = vst [vmem:[#allocation29_spill] sm:$0xff] %v7160_v61  ;;  %v7165_v60 = vld [vmem:[%s8359_s1 + $0x2b8] sm:$0xff] }
  0x52   :  { %5805 = vmatpush3.msra.mxu0 %v7132_v63  ;;  %5840 = vmatpush3.msra.mxu1 %v7137_v62  ;;  %8455 = vst [vmem:[#allocation30_spill] sm:$0xff] %v7165_v60  ;;  %v7174_v62 = vld [vmem:[%s8359_s1 + $0x230] sm:$0xff] }
  0x53   :  { %5806 = vmatprep.subr.mxu0 %v6545_v2  ;;  %5841 = vmatprep.subr.mxu1 %v6545_v2  ;;  %8456 = vst [vmem:[#allocation31_spill] sm:$0xff] %v7174_v62  ;;  %v7179_v63 = vld [vmem:[%s8359_s1 + $0x2b0] sm:$0xff] }
  0x54   :  { %5807 = vmatpush3.msra.mxu0 %v7146_v58  ;;  %5842 = vmatpush3.msra.mxu1 %v7151_v59  ;;  %8457 = vst [vmem:[#allocation32_spill] sm:$0xff] %v7179_v63  ;;  %v7188_v59 = vld [vmem:[%s8359_s1 + $0x228] sm:$0xff] }
  0x55   :  { %5808 = vmatprep.subr.mxu0 %v6545_v2  ;;  %5843 = vmatprep.subr.mxu1 %v6545_v2  ;;  %8458 = vst [vmem:[#allocation33_spill] sm:$0xff] %v7188_v59  ;;  %v7193_v58 = vld [vmem:[%s8359_s1 + $0x2a8] sm:$0xff] }
  0x56   :  { %5809 = vmatpush3.msra.mxu0 %v7160_v61  ;;  %5844 = vmatpush3.msra.mxu1 %v7165_v60  ;;  %8459 = vst [vmem:[#allocation34_spill] sm:$0xff] %v7193_v58  ;;  %v7202_v60 = vld [vmem:[%s8359_s1 + $0x220] sm:$0xff] }
  0x57   :  { %5810 = vmatprep.subr.mxu0 %v6545_v2  ;;  %5845 = vmatprep.subr.mxu1 %v6545_v2  ;;  %8460 = vst [vmem:[#allocation35_spill] sm:$0xff] %v7202_v60  ;;  %v7207_v61 = vld [vmem:[%s8359_s1 + $0x2a0] sm:$0xff] }
  0x58   :  { %5811 = vmatpush3.msra.mxu0 %v7174_v62  ;;  %5846 = vmatpush3.msra.mxu1 %v7179_v63  ;;  %8461 = vst [vmem:[#allocation36_spill] sm:$0xff] %v7207_v61  ;;  %v7216_v63 = vld [vmem:[%s8359_s1 + $0x218] sm:$0xff] }
  0x59   :  { %5812 = vmatprep.subr.mxu0 %v6545_v2  ;;  %5847 = vmatprep.subr.mxu1 %v6545_v2  ;;  %8462 = vst [vmem:[#allocation37_spill] sm:$0xff] %v7216_v63  ;;  %v7221_v62 = vld [vmem:[%s8359_s1 + $0x298] sm:$0xff] }
  0x5a   :  { %5813 = vmatpush3.msra.mxu0 %v7188_v59  ;;  %5848 = vmatpush3.msra.mxu1 %v7193_v58  ;;  %8463 = vst [vmem:[#allocation38_spill] sm:$0xff] %v7221_v62  ;;  %v7230_v58 = vld [vmem:[%s8359_s1 + $0x210] sm:$0xff] }
  0x5b   :  { %5814 = vmatprep.subr.mxu0 %v6545_v2  ;;  %5849 = vmatprep.subr.mxu1 %v6545_v2  ;;  %8464 = vst [vmem:[#allocation39_spill] sm:$0xff] %v7230_v58  ;;  %v7235_v59 = vld [vmem:[%s8359_s1 + $0x290] sm:$0xff] }
  0x5c   :  { %5815 = vmatpush3.msra.mxu0 %v7202_v60  ;;  %5850 = vmatpush3.msra.mxu1 %v7207_v61  ;;  %8465 = vst [vmem:[#allocation40_spill] sm:$0xff] %v7235_v59  ;;  %v7244_v61 = vld [vmem:[%s8359_s1 + $0x208] sm:$0xff] }
  0x5d   :  { %5816 = vmatprep.subr.mxu0 %v6545_v2  ;;  %5851 = vmatprep.subr.mxu1 %v6545_v2  ;;  %8466 = vst [vmem:[#allocation41_spill] sm:$0xff] %v7244_v61  ;;  %v7249_v60 = vld [vmem:[%s8359_s1 + $0x288] sm:$0xff] }
  0x5e   :  { %5817 = vmatpush3.msra.mxu0 %v7216_v63  ;;  %5852 = vmatpush3.msra.mxu1 %v7221_v62  ;;  %8467 = vst [vmem:[#allocation42_spill] sm:$0xff] %v7249_v60  ;;  %v7258_v62 = vld [vmem:[%s8359_s1 + $0x200] sm:$0xff] }
  0x5f   :  { %5818 = vmatprep.subr.mxu0 %v6545_v2  ;;  %5853 = vmatprep.subr.mxu1 %v6545_v2  ;;  %8468 = vst [vmem:[#allocation43_spill] sm:$0xff] %v7258_v62  ;;  %v7265_v63 = vld [vmem:[%s8359_s1 + $0x280] sm:$0xff] }
  0x60   :  { %5819 = vmatpush3.msra.mxu0 %v7230_v58  ;;  %5854 = vmatpush3.msra.mxu1 %v7235_v59  ;;  %8469 = vst [vmem:[#allocation44_spill] sm:$0xff] %v7265_v63  ;;  %v7306_v59 = vld [vmem:[%s8359_s1 + $0x368] sm:$0xff] }
  0x61   :  { %5820 = vmatprep.subr.mxu0 %v6545_v2  ;;  %5855 = vmatprep.subr.mxu1 %v6545_v2  ;;  %8474 = vst [vmem:[#allocation49_spill] sm:$0xff] %v7306_v59  ;;  %v7311_v58 = vld [vmem:[%s8359_s1 + $0x3e8] sm:$0xff] }
  0x62   :  { %5821 = vmatpush3.msra.mxu0 %v7244_v61  ;;  %5856 = vmatpush3.msra.mxu1 %v7249_v60  ;;  %v7278_v60 = vld [vmem:[%s8359_s1 + $0x378] sm:$0xff]  ;;  %8475 = vst [vmem:[#allocation50_spill] sm:$0xff] %v7311_v58 }
  0x63   :  { %5822 = vmatprep.subr.mxu0 %v6545_v2  ;;  %5857 = vmatprep.subr.mxu1 %v6545_v2  ;;  %8470 = vst [vmem:[#allocation45_spill] sm:$0xff] %v7278_v60  ;;  %v7283_v61 = vld [vmem:[%s8359_s1 + $0x3f8] sm:$0xff] }
  0x64   :  { %5823 = vmatpush3.msra.mxu0 %v7258_v62  ;;  %5824 = vmatprep.mubr.msk.f32.mxu0 %vm6546_vm0, %v6545_v2  ;;  %8471 = vst [vmem:[#allocation46_spill] sm:$0xff] %v7283_v61  ;;  %v7297_v62 = vld [vmem:[%s8359_s1 + $0x3f0] sm:$0xff] }
  0x65   :  { %5858 = vmatpush3.msra.mxu1 %v7265_v63  ;;  %5859 = vmatprep.mubr.msk.f32.mxu1 %vm6546_vm0, %v6545_v2  ;;  %v7292_v63 = vld [vmem:[%s8359_s1 + $0x370] sm:$0xff]  ;;  %8473 = vst [vmem:[#allocation48_spill] sm:$0xff] %v7297_v62 }
  0x66   :  { %5825 = vmatmul.mubr.f32.vlgmr.msra.gmra.mxu0 %v6807_v33  ;;  %5860 = vmatmul.mubr.f32.vlgmr.msra.gmra.mxu1 %v6807_v33  ;;  %8472 = vst [vmem:[#allocation47_spill] sm:$0xff] %v7292_v63 }
  0x67   :  { %5862 = vmatprep.subr.mxu0 %v6545_v2  ;;  %5897 = vmatprep.subr.mxu1 %v6545_v2 }
  0x68   :  { %5863 = vmatpush3.msra.mxu0 %v7278_v60  ;;  %5898 = vmatpush3.msra.mxu1 %v7283_v61  ;;  %v7320_v61 = vld [vmem:[%s8359_s1 + $0x360] sm:$0xff] }
  0x69   :  { %5864 = vmatprep.subr.mxu0 %v6545_v2  ;;  %5899 = vmatprep.subr.mxu1 %v6545_v2  ;;  %8476 = vst [vmem:[#allocation51_spill] sm:$0xff] %v7320_v61  ;;  %v7325_v60 = vld [vmem:[%s8359_s1 + $0x3e0] sm:$0xff] }
  0x6a   :  { %5865 = vmatpush3.msra.mxu0 %v7292_v63  ;;  %5900 = vmatpush3.msra.mxu1 %v7297_v62  ;;  %8477 = vst [vmem:[#allocation52_spill] sm:$0xff] %v7325_v60  ;;  %v7334_v62 = vld [vmem:[%s8359_s1 + $0x358] sm:$0xff] }
  0x6b   :  { %5866 = vmatprep.subr.mxu0 %v6545_v2  ;;  %5901 = vmatprep.subr.mxu1 %v6545_v2  ;;  %8478 = vst [vmem:[#allocation53_spill] sm:$0xff] %v7334_v62  ;;  %v7339_v63 = vld [vmem:[%s8359_s1 + $0x3d8] sm:$0xff] }
  0x6c   :  { %5867 = vmatpush3.msra.mxu0 %v7306_v59  ;;  %5902 = vmatpush3.msra.mxu1 %v7311_v58  ;;  %8479 = vst [vmem:[#allocation54_spill] sm:$0xff] %v7339_v63  ;;  %v7348_v58 = vld [vmem:[%s8359_s1 + $0x350] sm:$0xff] }
  0x6d   :  { %5868 = vmatprep.subr.mxu0 %v6545_v2  ;;  %5903 = vmatprep.subr.mxu1 %v6545_v2  ;;  %8480 = vst [vmem:[#allocation55_spill] sm:$0xff] %v7348_v58  ;;  %v7353_v59 = vld [vmem:[%s8359_s1 + $0x3d0] sm:$0xff] }
  0x6e   :  { %5869 = vmatpush3.msra.mxu0 %v7320_v61  ;;  %5904 = vmatpush3.msra.mxu1 %v7325_v60  ;;  %8481 = vst [vmem:[#allocation56_spill] sm:$0xff] %v7353_v59  ;;  %v7362_v60 = vld [vmem:[%s8359_s1 + $0x348] sm:$0xff] }
  0x6f   :  { %5870 = vmatprep.subr.mxu0 %v6545_v2  ;;  %5905 = vmatprep.subr.mxu1 %v6545_v2  ;;  %8482 = vst [vmem:[#allocation57_spill] sm:$0xff] %v7362_v60  ;;  %v7367_v61 = vld [vmem:[%s8359_s1 + $0x3c8] sm:$0xff] }
  0x70   :  { %5871 = vmatpush3.msra.mxu0 %v7334_v62  ;;  %5906 = vmatpush3.msra.mxu1 %v7339_v63  ;;  %8483 = vst [vmem:[#allocation58_spill] sm:$0xff] %v7367_v61  ;;  %v7376_v63 = vld [vmem:[%s8359_s1 + $0x340] sm:$0xff] }
  0x71   :  { %5872 = vmatprep.subr.mxu0 %v6545_v2  ;;  %5907 = vmatprep.subr.mxu1 %v6545_v2  ;;  %8484 = vst [vmem:[#allocation59_spill] sm:$0xff] %v7376_v63  ;;  %v7381_v62 = vld [vmem:[%s8359_s1 + $0x3c0] sm:$0xff] }
  0x72   :  { %5873 = vmatpush3.msra.mxu0 %v7348_v58  ;;  %5908 = vmatpush3.msra.mxu1 %v7353_v59  ;;  %8485 = vst [vmem:[#allocation60_spill] sm:$0xff] %v7381_v62  ;;  %v7390_v59 = vld [vmem:[%s8359_s1 + $0x338] sm:$0xff] }
  0x73   :  { %5874 = vmatprep.subr.mxu0 %v6545_v2  ;;  %5909 = vmatprep.subr.mxu1 %v6545_v2  ;;  %8486 = vst [vmem:[#allocation61_spill] sm:$0xff] %v7390_v59  ;;  %v7395_v58 = vld [vmem:[%s8359_s1 + $0x3b8] sm:$0xff] }
  0x74   :  { %5875 = vmatpush3.msra.mxu0 %v7362_v60  ;;  %5910 = vmatpush3.msra.mxu1 %v7367_v61  ;;  %8487 = vst [vmem:[#allocation62_spill] sm:$0xff] %v7395_v58  ;;  %v7404_v61 = vld [vmem:[%s8359_s1 + $0x330] sm:$0xff] }
  0x75   :  { %5876 = vmatprep.subr.mxu0 %v6545_v2  ;;  %5911 = vmatprep.subr.mxu1 %v6545_v2  ;;  %8488 = vst [vmem:[#allocation63_spill] sm:$0xff] %v7404_v61  ;;  %v7409_v60 = vld [vmem:[%s8359_s1 + $0x3b0] sm:$0xff] }
  0x76   :  { %5877 = vmatpush3.msra.mxu0 %v7376_v63  ;;  %5912 = vmatpush3.msra.mxu1 %v7381_v62  ;;  %8489 = vst [vmem:[#allocation64_spill] sm:$0xff] %v7409_v60  ;;  %v7418_v62 = vld [vmem:[%s8359_s1 + $0x328] sm:$0xff] }
  0x77   :  { %5878 = vmatprep.subr.mxu0 %v6545_v2  ;;  %5913 = vmatprep.subr.mxu1 %v6545_v2  ;;  %8490 = vst [vmem:[#allocation65_spill] sm:$0xff] %v7418_v62  ;;  %v7423_v63 = vld [vmem:[%s8359_s1 + $0x3a8] sm:$0xff] }
  0x78   :  { %5879 = vmatpush3.msra.mxu0 %v7390_v59  ;;  %5914 = vmatpush3.msra.mxu1 %v7395_v58  ;;  %8491 = vst [vmem:[#allocation66_spill] sm:$0xff] %v7423_v63  ;;  %v7432_v58 = vld [vmem:[%s8359_s1 + $0x320] sm:$0xff] }
  0x79   :  { %5880 = vmatprep.subr.mxu0 %v6545_v2  ;;  %5915 = vmatprep.subr.mxu1 %v6545_v2  ;;  %8492 = vst [vmem:[#allocation67_spill] sm:$0xff] %v7432_v58  ;;  %v7437_v59 = vld [vmem:[%s8359_s1 + $0x3a0] sm:$0xff] }
  0x7a   :  { %5881 = vmatpush3.msra.mxu0 %v7404_v61  ;;  %5916 = vmatpush3.msra.mxu1 %v7409_v60  ;;  %8493 = vst [vmem:[#allocation68_spill] sm:$0xff] %v7437_v59  ;;  %v7446_v60 = vld [vmem:[%s8359_s1 + $0x318] sm:$0xff] }
  0x7b   :  { %5882 = vmatprep.subr.mxu0 %v6545_v2  ;;  %5917 = vmatprep.subr.mxu1 %v6545_v2  ;;  %8494 = vst [vmem:[#allocation69_spill] sm:$0xff] %v7446_v60  ;;  %v7451_v61 = vld [vmem:[%s8359_s1 + $0x398] sm:$0xff] }
  0x7c   :  { %5883 = vmatpush3.msra.mxu0 %v7418_v62  ;;  %5918 = vmatpush3.msra.mxu1 %v7423_v63  ;;  %8495 = vst [vmem:[#allocation70_spill] sm:$0xff] %v7451_v61  ;;  %v7460_v63 = vld [vmem:[%s8359_s1 + $0x310] sm:$0xff] }
  0x7d   :  { %5884 = vmatprep.subr.mxu0 %v6545_v2  ;;  %5919 = vmatprep.subr.mxu1 %v6545_v2  ;;  %v7465_v62 = vld [vmem:[%s8359_s1 + $0x390] sm:$0xff] }
  0x7e   :  { %5885 = vmatpush3.msra.mxu0 %v7432_v58  ;;  %5920 = vmatpush3.msra.mxu1 %v7437_v59  ;;  %v7474_v59 = vld [vmem:[%s8359_s1 + $0x308] sm:$0xff] }
  0x7f   :  { %5886 = vmatprep.subr.mxu0 %v6545_v2  ;;  %5921 = vmatprep.subr.mxu1 %v6545_v2  ;;  %v7479_v58 = vld [vmem:[%s8359_s1 + $0x388] sm:$0xff] }
  0x80   :  { %5887 = vmatpush3.msra.mxu0 %v7446_v60  ;;  %5922 = vmatpush3.msra.mxu1 %v7451_v61  ;;  %v7488_v61 = vld [vmem:[%s8359_s1 + $0x300] sm:$0xff] }
  0x81   :  { %5888 = vmatprep.subr.mxu0 %v6545_v2  ;;  %5923 = vmatprep.subr.mxu1 %v6545_v2  ;;  %v7495_v60 = vld [vmem:[%s8359_s1 + $0x380] sm:$0xff] }
  0x82   :  { %5889 = vmatpush3.msra.mxu0 %v7460_v63  ;;  %5924 = vmatpush3.msra.mxu1 %v7465_v62 }
  0x83   :  { %5890 = vmatprep.subr.mxu0 %v6545_v2  ;;  %5925 = vmatprep.subr.mxu1 %v6545_v2 }
  0x84   :  { %5891 = vmatpush3.msra.mxu0 %v7474_v59  ;;  %5926 = vmatpush3.msra.mxu1 %v7479_v58 }
  0x85   :  { %5892 = vmatprep.subr.mxu0 %v6545_v2  ;;  %5927 = vmatprep.subr.mxu1 %v6545_v2 }
  0x86   :  { %5893 = vmatpush3.msra.mxu0 %v7488_v61  ;;  %5894 = vmatprep.mubr.msk.f32.mxu0 %vm6546_vm0, %v6545_v2 }
  0x87   :  { %5928 = vmatpush3.msra.mxu1 %v7495_v60  ;;  %5929 = vmatprep.mubr.msk.f32.mxu1 %vm6546_vm0, %v6545_v2 }
  0x88   :  { %5895 = vmatmul.mubr.f32.vlgmr.msra.gmra.mxu0 %v6807_v33  ;;  %5930 = vmatmul.mubr.f32.vlgmr.msra.gmra.mxu1 %v6807_v33 }
  0x89   :  { %5932 = vmatprep.subr.mxu0 %v6545_v2  ;;  %5967 = vmatprep.subr.mxu1 %v6545_v2 }
  0x8a   :  { %5933 = vmatpush3.msra.mxu0 %v6585_v0  ;;  %5968 = vmatpush3.msra.mxu1 %v6590_v1  ;;  %v7572_v0 = vld [vmem:[%s8358_s0 + $0x8] sm:$0xff]  ;;  %v8496_v1 = vld [vmem:[#allocation5_spill] sm:$0xff] }
  0x8b   :  { %5934 = vmatprep.subr.mxu0 %v6545_v2  ;;  %5969 = vmatprep.subr.mxu1 %v6545_v2 }
  0x8c   :  { %5935 = vmatpush3.msra.mxu0 %v6597_v3  ;;  %5970 = vmatpush3.msra.mxu1 %v6602_v4  ;;  %v8497_v3 = vld [vmem:[#allocation6_spill] sm:$0xff]  ;;  %v8498_v4 = vld [vmem:[#allocation7_spill] sm:$0xff] }
  0x8d   :  { %5936 = vmatprep.subr.mxu0 %v6545_v2  ;;  %5971 = vmatprep.subr.mxu1 %v6545_v2 }
  0x8e   :  { %5937 = vmatpush3.msra.mxu0 %v6611_v5  ;;  %5972 = vmatpush3.msra.mxu1 %v6616_v6  ;;  %v8499_v5 = vld [vmem:[#allocation8_spill] sm:$0xff]  ;;  %v8500_v6 = vld [vmem:[#allocation9_spill] sm:$0xff] }
  0x8f   :  { %5938 = vmatprep.subr.mxu0 %v6545_v2  ;;  %5973 = vmatprep.subr.mxu1 %v6545_v2 }
  0x90   :  { %5939 = vmatpush3.msra.mxu0 %v6625_v7  ;;  %5974 = vmatpush3.msra.mxu1 %v6630_v8  ;;  %v8501_v7 = vld [vmem:[#allocation10_spill] sm:$0xff]  ;;  %v8502_v8 = vld [vmem:[#allocation11_spill] sm:$0xff] }
  0x91   :  { %5940 = vmatprep.subr.mxu0 %v6545_v2  ;;  %5975 = vmatprep.subr.mxu1 %v6545_v2 }
  0x92   :  { %5941 = vmatpush3.msra.mxu0 %v6639_v9  ;;  %5976 = vmatpush3.msra.mxu1 %v6644_v10  ;;  %v8503_v9 = vld [vmem:[#allocation12_spill] sm:$0xff]  ;;  %v8504_v10 = vld [vmem:[#allocation13_spill] sm:$0xff] }
  0x93   :  { %5942 = vmatprep.subr.mxu0 %v6545_v2  ;;  %5977 = vmatprep.subr.mxu1 %v6545_v2 }
  0x94   :  { %5943 = vmatpush3.msra.mxu0 %v6653_v11  ;;  %5978 = vmatpush3.msra.mxu1 %v6658_v12  ;;  %v8505_v11 = vld [vmem:[#allocation14_spill] sm:$0xff]  ;;  %v8506_v12 = vld [vmem:[#allocation15_spill] sm:$0xff] }
  0x95   :  { %5944 = vmatprep.subr.mxu0 %v6545_v2  ;;  %5979 = vmatprep.subr.mxu1 %v6545_v2 }
  0x96   :  { %5945 = vmatpush3.msra.mxu0 %v6667_v13  ;;  %5980 = vmatpush3.msra.mxu1 %v6672_v14  ;;  %v8507_v13 = vld [vmem:[#allocation16_spill] sm:$0xff]  ;;  %v8508_v14 = vld [vmem:[#allocation17_spill] sm:$0xff] }
  0x97   :  { %5946 = vmatprep.subr.mxu0 %v6545_v2  ;;  %5981 = vmatprep.subr.mxu1 %v6545_v2 }
  0x98   :  { %5947 = vmatpush3.msra.mxu0 %v6681_v15  ;;  %5982 = vmatpush3.msra.mxu1 %v6686_v16  ;;  %v8509_v15 = vld [vmem:[#allocation18_spill] sm:$0xff]  ;;  %v8510_v16 = vld [vmem:[#allocation19_spill] sm:$0xff] }
  0x99   :  { %5948 = vmatprep.subr.mxu0 %v6545_v2  ;;  %5983 = vmatprep.subr.mxu1 %v6545_v2 }
  0x9a   :  { %5949 = vmatpush3.msra.mxu0 %v6695_v17  ;;  %5984 = vmatpush3.msra.mxu1 %v6700_v18  ;;  %v8511_v17 = vld [vmem:[#allocation20_spill] sm:$0xff]  ;;  %v8512_v18 = vld [vmem:[#allocation21_spill] sm:$0xff] }
  0x9b   :  { %5950 = vmatprep.subr.mxu0 %v6545_v2  ;;  %5985 = vmatprep.subr.mxu1 %v6545_v2 }
  0x9c   :  { %5951 = vmatpush3.msra.mxu0 %v6709_v19  ;;  %5986 = vmatpush3.msra.mxu1 %v6714_v20  ;;  %v8513_v19 = vld [vmem:[#allocation22_spill] sm:$0xff]  ;;  %v8514_v20 = vld [vmem:[#allocation23_spill] sm:$0xff] }
  0x9d   :  { %5952 = vmatprep.subr.mxu0 %v6545_v2  ;;  %5987 = vmatprep.subr.mxu1 %v6545_v2 }
  0x9e   :  { %5953 = vmatpush3.msra.mxu0 %v6723_v21  ;;  %5988 = vmatpush3.msra.mxu1 %v6728_v22  ;;  %v8515_v21 = vld [vmem:[#allocation24_spill] sm:$0xff]  ;;  %v8516_v22 = vld [vmem:[#allocation25_spill] sm:$0xff] }
  0x9f   :  { %5954 = vmatprep.subr.mxu0 %v6545_v2  ;;  %5989 = vmatprep.subr.mxu1 %v6545_v2 }
  0xa0   :  { %5955 = vmatpush3.msra.mxu0 %v6737_v23  ;;  %5990 = vmatpush3.msra.mxu1 %v6742_v24  ;;  %v8517_v23 = vld [vmem:[#allocation26_spill] sm:$0xff]  ;;  %v8518_v24 = vld [vmem:[#allocation27_spill] sm:$0xff] }
  0xa1   :  { %5956 = vmatprep.subr.mxu0 %v6545_v2  ;;  %5991 = vmatprep.subr.mxu1 %v6545_v2 }
  0xa2   :  { %5957 = vmatpush3.msra.mxu0 %v6751_v25  ;;  %5992 = vmatpush3.msra.mxu1 %v6756_v26  ;;  %v8519_v25 = vld [vmem:[#allocation28_spill] sm:$0xff]  ;;  %v8520_v26 = vld [vmem:[#allocation29_spill] sm:$0xff] }
  0xa3   :  { %5958 = vmatprep.subr.mxu0 %v6545_v2  ;;  %5993 = vmatprep.subr.mxu1 %v6545_v2 }
  0xa4   :  { %5959 = vmatpush3.msra.mxu0 %v6765_v27  ;;  %5994 = vmatpush3.msra.mxu1 %v6770_v28  ;;  %v8521_v27 = vld [vmem:[#allocation30_spill] sm:$0xff]  ;;  %v8522_v28 = vld [vmem:[#allocation31_spill] sm:$0xff] }
  0xa5   :  { %5960 = vmatprep.subr.mxu0 %v6545_v2  ;;  %5995 = vmatprep.subr.mxu1 %v6545_v2 }
  0xa6   :  { %5961 = vmatpush3.msra.mxu0 %v6779_v29  ;;  %5996 = vmatpush3.msra.mxu1 %v6784_v30  ;;  %v8523_v29 = vld [vmem:[#allocation32_spill] sm:$0xff]  ;;  %v8524_v30 = vld [vmem:[#allocation33_spill] sm:$0xff] }
  0xa7   :  { %5962 = vmatprep.subr.mxu0 %v6545_v2  ;;  %5997 = vmatprep.subr.mxu1 %v6545_v2 }
  0xa8   :  { %5963 = vmatpush3.msra.mxu0 %v6793_v31  ;;  %5964 = vmatprep.mubr.msk.f32.mxu0 %vm6546_vm0, %v6545_v2  ;;  %v8525_v31 = vld [vmem:[#allocation34_spill] sm:$0xff] }
  0xa9   :  { %5998 = vmatpush3.msra.mxu1 %v6800_v32  ;;  %5999 = vmatprep.mubr.msk.f32.mxu1 %vm6546_vm0, %v6545_v2 }
  0xaa   :  { %5965 = vmatmul.mubr.f32.vlgmr.msra.gmra.mxu0 %v7572_v0  ;;  %6000 = vmatmul.mubr.f32.vlgmr.msra.gmra.mxu1 %v7572_v0 }
  0xab   :  { %6002 = vmatprep.subr.mxu0 %v6545_v2  ;;  %6037 = vmatprep.subr.mxu1 %v6545_v2 }
  0xac   :  { %6003 = vmatpush3.msra.mxu0 %v6818_v34  ;;  %6038 = vmatpush3.msra.mxu1 %v6823_v35  ;;  %v8526_v34 = vld [vmem:[#allocation35_spill] sm:$0xff]  ;;  %v8527_v35 = vld [vmem:[#allocation36_spill] sm:$0xff] }
  0xad   :  { %6004 = vmatprep.subr.mxu0 %v6545_v2  ;;  %6039 = vmatprep.subr.mxu1 %v6545_v2 }
  0xae   :  { %6005 = vmatpush3.msra.mxu0 %v6832_v36  ;;  %6040 = vmatpush3.msra.mxu1 %v6837_v37 }
  0xaf   :  { %6006 = vmatprep.subr.mxu0 %v6545_v2  ;;  %6041 = vmatprep.subr.mxu1 %v6545_v2 }
  0xb0   :  { %6007 = vmatpush3.msra.mxu0 %v6846_v38  ;;  %6042 = vmatpush3.msra.mxu1 %v6851_v39  ;;  %v8528_v38 = vld [vmem:[#allocation37_spill] sm:$0xff]  ;;  %v8529_v39 = vld [vmem:[#allocation38_spill] sm:$0xff] }
  0xb1   :  { %6008 = vmatprep.subr.mxu0 %v6545_v2  ;;  %6043 = vmatprep.subr.mxu1 %v6545_v2 }
  0xb2   :  { %6009 = vmatpush3.msra.mxu0 %v6860_v40  ;;  %6044 = vmatpush3.msra.mxu1 %v6865_v41  ;;  %v8530_v40 = vld [vmem:[#allocation39_spill] sm:$0xff]  ;;  %v8531_v41 = vld [vmem:[#allocation40_spill] sm:$0xff] }
  0xb3   :  { %6010 = vmatprep.subr.mxu0 %v6545_v2  ;;  %6045 = vmatprep.subr.mxu1 %v6545_v2 }
  0xb4   :  { %6011 = vmatpush3.msra.mxu0 %v6874_v42  ;;  %6046 = vmatpush3.msra.mxu1 %v6879_v43  ;;  %v8532_v42 = vld [vmem:[#allocation41_spill] sm:$0xff]  ;;  %v8533_v43 = vld [vmem:[#allocation42_spill] sm:$0xff] }
  0xb5   :  { %6012 = vmatprep.subr.mxu0 %v6545_v2  ;;  %6047 = vmatprep.subr.mxu1 %v6545_v2 }
  0xb6   :  { %6013 = vmatpush3.msra.mxu0 %v6888_v44  ;;  %6048 = vmatpush3.msra.mxu1 %v6893_v45  ;;  %v8534_v44 = vld [vmem:[#allocation43_spill] sm:$0xff] }
  0xb7   :  { %6014 = vmatprep.subr.mxu0 %v6545_v2  ;;  %6049 = vmatprep.subr.mxu1 %v6545_v2  ;;  %v7720_v45 = vld [vmem:[%s8360_s2] ss:$0 sm:$0xff] }
  0xb8   :  { %6015 = vmatpush3.msra.mxu0 %v6902_v46  ;;  %6050 = vmatpush3.msra.mxu1 %v6907_v47  ;;  %v8535_v46 = vld [vmem:[#allocation44_spill] sm:$0xff] }
  0xb9   :  { %6016 = vmatprep.subr.mxu0 %v6545_v2  ;;  %6051 = vmatprep.subr.mxu1 %v6545_v2 }
  0xba   :  { %6017 = vmatpush3.msra.mxu0 %v6916_v48  ;;  %6052 = vmatpush3.msra.mxu1 %v6921_v49  ;;  %v8536_v48 = vld [vmem:[#allocation45_spill] sm:$0xff]  ;;  %v8537_v49 = vld [vmem:[#allocation46_spill] sm:$0xff] }
  0xbb   :  { %6018 = vmatprep.subr.mxu0 %v6545_v2  ;;  %6053 = vmatprep.subr.mxu1 %v6545_v2 }
  0xbc   :  { %6019 = vmatpush3.msra.mxu0 %v6930_v50  ;;  %6054 = vmatpush3.msra.mxu1 %v6935_v51  ;;  %v7739_v50 = vld [vmem:[%s8360_s2 + $0x1] ss:$0 sm:$0xff] }
  0xbd   :  { %6020 = vmatprep.subr.mxu0 %v6545_v2  ;;  %6055 = vmatprep.subr.mxu1 %v6545_v2  ;;  %v8538_v51 = vld [vmem:[#allocation47_spill] sm:$0xff] }
  0xbe   :  { %6021 = vmatpush3.msra.mxu0 %v6944_v52  ;;  %6056 = vmatpush3.msra.mxu1 %v6949_v53  ;;  %v8539_v52 = vld [vmem:[#allocation48_spill] sm:$0xff]  ;;  %v8540_v53 = vld [vmem:[#allocation49_spill] sm:$0xff] }
  0xbf   :  { %6022 = vmatprep.subr.mxu0 %v6545_v2  ;;  %6057 = vmatprep.subr.mxu1 %v6545_v2 }
  0xc0   :  { %6023 = vmatpush3.msra.mxu0 %v6958_v54  ;;  %6058 = vmatpush3.msra.mxu1 %v6963_v55  ;;  %v8541_v55 = vld [vmem:[#allocation50_spill] sm:$0xff] }
  0xc1   :  { %6024 = vmatprep.subr.mxu0 %v6545_v2  ;;  %6059 = vmatprep.subr.mxu1 %v6545_v2 }
  0xc2   :  { %6025 = vmatpush3.msra.mxu0 %v6972_v56  ;;  %6060 = vmatpush3.msra.mxu1 %v6977_v57  ;;  %v8542_v56 = vld [vmem:[#allocation51_spill] sm:$0xff]  ;;  %v8543_v57 = vld [vmem:[#allocation52_spill] sm:$0xff] }
  0xc3   :  { %6026 = vmatprep.subr.mxu0 %v6545_v2  ;;  %6061 = vmatprep.subr.mxu1 %v6545_v2 }
  0xc4   :  { %6027 = vmatpush3.msra.mxu0 %v8496_v1  ;;  %6062 = vmatpush3.msra.mxu1 %v8497_v3  ;;  %v8544_v1 = vld [vmem:[#allocation53_spill] sm:$0xff]  ;;  %v8545_v3 = vld [vmem:[#allocation54_spill] sm:$0xff] }
  0xc5   :  { %6028 = vmatprep.subr.mxu0 %v6545_v2  ;;  %6063 = vmatprep.subr.mxu1 %v6545_v2 }
  0xc6   :  { %6029 = vmatpush3.msra.mxu0 %v8498_v4  ;;  %6064 = vmatpush3.msra.mxu1 %v8499_v5  ;;  %v8546_v4 = vld [vmem:[#allocation55_spill] sm:$0xff]  ;;  %v8547_v5 = vld [vmem:[#allocation56_spill] sm:$0xff] }
  0xc7   :  { %6030 = vmatprep.subr.mxu0 %v6545_v2  ;;  %6065 = vmatprep.subr.mxu1 %v6545_v2 }
  0xc8   :  { %6031 = vmatpush3.msra.mxu0 %v8500_v6  ;;  %6066 = vmatpush3.msra.mxu1 %v8501_v7  ;;  %v8548_v6 = vld [vmem:[#allocation57_spill] sm:$0xff]  ;;  %v8549_v7 = vld [vmem:[#allocation58_spill] sm:$0xff] }
  0xc9   :  { %6032 = vmatprep.subr.mxu0 %v6545_v2  ;;  %6067 = vmatprep.subr.mxu1 %v6545_v2 }
  0xca   :  { %6033 = vmatpush3.msra.mxu0 %v8502_v8  ;;  %6034 = vmatprep.mubr.msk.f32.mxu0 %vm6546_vm0, %v6545_v2  ;;  %v8550_v8 = vld [vmem:[#allocation59_spill] sm:$0xff] }
  0xcb   :  { %6068 = vmatpush3.msra.mxu1 %v8503_v9  ;;  %6069 = vmatprep.mubr.msk.f32.mxu1 %vm6546_vm0, %v6545_v2  ;;  %v8551_v9 = vld [vmem:[#allocation60_spill] sm:$0xff] }
  0xcc   :  { %6035 = vmatmul.mubr.f32.vlgmr.msra.gmra.mxu0 %v7572_v0  ;;  %6070 = vmatmul.mubr.f32.vlgmr.msra.gmra.mxu1 %v7572_v0 }
  0xcd   :  { %6072 = vmatprep.subr.mxu0 %v6545_v2  ;;  %6107 = vmatprep.subr.mxu1 %v6545_v2 }
  0xce   :  { %6073 = vmatpush3.msra.mxu0 %v8504_v10  ;;  %6108 = vmatpush3.msra.mxu1 %v8505_v11  ;;  %v8552_v10 = vld [vmem:[#allocation61_spill] sm:$0xff]  ;;  %v8553_v11 = vld [vmem:[#allocation62_spill] sm:$0xff] }
  0xcf   :  { %6074 = vmatprep.subr.mxu0 %v6545_v2  ;;  %6109 = vmatprep.subr.mxu1 %v6545_v2 }
  0xd0   :  { %6075 = vmatpush3.msra.mxu0 %v8506_v12  ;;  %6110 = vmatpush3.msra.mxu1 %v8507_v13  ;;  %v8554_v12 = vld [vmem:[#allocation63_spill] sm:$0xff]  ;;  %v8555_v13 = vld [vmem:[#allocation64_spill] sm:$0xff] }
  0xd1   :  { %6076 = vmatprep.subr.mxu0 %v6545_v2  ;;  %6111 = vmatprep.subr.mxu1 %v6545_v2 }
  0xd2   :  { %6077 = vmatpush3.msra.mxu0 %v8508_v14  ;;  %6112 = vmatpush3.msra.mxu1 %v8509_v15 }
  0xd3   :  { %6078 = vmatprep.subr.mxu0 %v6545_v2  ;;  %6113 = vmatprep.subr.mxu1 %v6545_v2 }
  0xd4   :  { %6079 = vmatpush3.msra.mxu0 %v8510_v16  ;;  %6114 = vmatpush3.msra.mxu1 %v8511_v17  ;;  %v8556_v16 = vld [vmem:[#allocation65_spill] sm:$0xff]  ;;  %v8557_v17 = vld [vmem:[#allocation66_spill] sm:$0xff] }
  0xd5   :  { %6080 = vmatprep.subr.mxu0 %v6545_v2  ;;  %6115 = vmatprep.subr.mxu1 %v6545_v2 }
  0xd6   :  { %6081 = vmatpush3.msra.mxu0 %v8512_v18  ;;  %6116 = vmatpush3.msra.mxu1 %v8513_v19 }
  0xd7   :  { %6082 = vmatprep.subr.mxu0 %v6545_v2  ;;  %6117 = vmatprep.subr.mxu1 %v6545_v2 }
  0xd8   :  { %6083 = vmatpush3.msra.mxu0 %v8514_v20  ;;  %6118 = vmatpush3.msra.mxu1 %v8515_v21  ;;  %v8558_v20 = vld [vmem:[#allocation67_spill] sm:$0xff]  ;;  %v8559_v21 = vld [vmem:[#allocation68_spill] sm:$0xff] }
  0xd9   :  { %6084 = vmatprep.subr.mxu0 %v6545_v2  ;;  %6119 = vmatprep.subr.mxu1 %v6545_v2 }
  0xda   :  { %6085 = vmatpush3.msra.mxu0 %v8516_v22  ;;  %6120 = vmatpush3.msra.mxu1 %v8517_v23  ;;  %v8560_v22 = vld [vmem:[#allocation69_spill] sm:$0xff]  ;;  %v8561_v23 = vld [vmem:[#allocation70_spill] sm:$0xff] }
  0xdb   :  { %6086 = vmatprep.subr.mxu0 %v6545_v2  ;;  %6121 = vmatprep.subr.mxu1 %v6545_v2 }
  0xdc   :  { %6087 = vmatpush3.msra.mxu0 %v8518_v24  ;;  %6122 = vmatpush3.msra.mxu1 %v8519_v25  ;;  %v7801_v24 = vld [vmem:[%s8360_s2 + $0x2] ss:$0 sm:$0xff] }
  0xdd   :  { %6088 = vmatprep.subr.mxu0 %v6545_v2  ;;  %6123 = vmatprep.subr.mxu1 %v6545_v2 }
  0xde   :  { %6089 = vmatpush3.msra.mxu0 %v8520_v26  ;;  %6124 = vmatpush3.msra.mxu1 %v8521_v27 }
  0xdf   :  { %6090 = vmatprep.subr.mxu0 %v6545_v2  ;;  %6125 = vmatprep.subr.mxu1 %v6545_v2 }
  0xe0   :  { %6091 = vmatpush3.msra.mxu0 %v8522_v28  ;;  %6126 = vmatpush3.msra.mxu1 %v8523_v29  ;;  %v7858_v29 = vld [vmem:[%s8360_s2 + $0x6] ss:$0 sm:$0xff] }
  0xe1   :  { %6092 = vmatprep.subr.mxu0 %v6545_v2  ;;  %6127 = vmatprep.subr.mxu1 %v6545_v2 }
  0xe2   :  { %6093 = vmatpush3.msra.mxu0 %v8524_v30  ;;  %6128 = vmatpush3.msra.mxu1 %v8525_v31  ;;  %v273_v32 = vpop.f32.mrf.mxu0  ;;  %v343_v33 = vpop.f32.mrf.mxu1  ;;  %v7863_v30 = vld [vmem:[%s8360_s2 + $0x7] ss:$0 sm:$0xff] }
  0xe3   :  { %6094 = vmatprep.subr.mxu0 %v6545_v2  ;;  %6129 = vmatprep.subr.mxu1 %v6545_v2  ;;  %v7728_v47 = vadd.f32 %v7720_v45, %v273_v32  ;;  %v7749_v54 = vadd.f32 %v7739_v50, %v343_v33 }
  0xe4   :  { %6095 = vmatpush3.msra.mxu0 %v8526_v34  ;;  %6130 = vmatpush3.msra.mxu1 %v8527_v35  ;;  %v5721_v36 = vpop.f32.mrf.mxu1  ;;  %v5686_v37 = vpop.f32.mrf.mxu0 }
  0xe5   :  { %6096 = vmatprep.subr.mxu0 %v6545_v2  ;;  %6131 = vmatprep.subr.mxu1 %v6545_v2 }
  0xe6   :  { %6097 = vmatpush3.msra.mxu0 %v8528_v38  ;;  %6132 = vmatpush3.msra.mxu1 %v8529_v39 }
  0xe7   :  { %6098 = vmatprep.subr.mxu0 %v6545_v2  ;;  %6133 = vmatprep.subr.mxu1 %v6545_v2 }
  0xe8   :  { %6099 = vmatpush3.msra.mxu0 %v8530_v40  ;;  %6134 = vmatpush3.msra.mxu1 %v8531_v41 }
  0xe9   :  { %6100 = vmatprep.subr.mxu0 %v6545_v2  ;;  %6135 = vmatprep.subr.mxu1 %v6545_v2 }
  0xea   :  { %6101 = vmatpush3.msra.mxu0 %v8532_v42  ;;  %6136 = vmatpush3.msra.mxu1 %v8533_v43 }
  0xeb   :  { %6102 = vmatprep.subr.mxu0 %v6545_v2  ;;  %6137 = vmatprep.subr.mxu1 %v6545_v2 }
  0xec   :  { %6103 = vmatpush3.msra.mxu0 %v8534_v44  ;;  %6104 = vmatprep.mubr.msk.f32.mxu0 %vm6546_vm0, %v6545_v2 }
  0xed   :  { %6138 = vmatpush3.msra.mxu1 %v8535_v46  ;;  %6139 = vmatprep.mubr.msk.f32.mxu1 %vm6546_vm0, %v6545_v2 }
  0xee   :  { %6105 = vmatmul.mubr.f32.vlgmr.msra.gmra.mxu0 %v7572_v0  ;;  %6140 = vmatmul.mubr.f32.vlgmr.msra.gmra.mxu1 %v7572_v0 }
  0xef   :  { %6142 = vmatprep.subr.mxu0 %v6545_v2  ;;  %6177 = vmatprep.subr.mxu1 %v6545_v2 }
  0xf0   :  { %6143 = vmatpush3.msra.mxu0 %v8536_v48  ;;  %6178 = vmatpush3.msra.mxu1 %v8537_v49 }
  0xf1   :  { %6144 = vmatprep.subr.mxu0 %v6545_v2  ;;  %6179 = vmatprep.subr.mxu1 %v6545_v2 }
  0xf2   :  { %6145 = vmatpush3.msra.mxu0 %v8538_v51  ;;  %6180 = vmatpush3.msra.mxu1 %v8539_v52 }
  0xf3   :  { %1328 = vrot.lane.b32.xlu0 %v7728_v47, %s6547_s30  ;;  %6146 = vmatprep.subr.mxu0 %v6545_v2 }
  0xf4   :  { %6181 = vmatprep.subr.mxu1 %v6545_v2  ;;  %6147 = vmatpush3.msra.mxu0 %v8540_v53 }
  0xf5   :  { %6182 = vmatpush3.msra.mxu1 %v8541_v55  ;;  %6148 = vmatprep.subr.mxu0 %v6545_v2 }
  0xf6   :  { %6183 = vmatprep.subr.mxu1 %v6545_v2  ;;  %6149 = vmatpush3.msra.mxu0 %v8542_v56 }
  0xf7   :  { %6184 = vmatpush3.msra.mxu1 %v8543_v57  ;;  %1406 = vrot.lane.b32.xlu0 %v7749_v54, %s6547_s30 }
  0xf8   :  { %6150 = vmatprep.subr.mxu0 %v6545_v2  ;;  %6185 = vmatprep.subr.mxu1 %v6545_v2 }
  0xf9   :  { %6151 = vmatpush3.msra.mxu0 %v8544_v1  ;;  %6186 = vmatpush3.msra.mxu1 %v8545_v3 }
  0xfa   :  { %6152 = vmatprep.subr.mxu0 %v6545_v2  ;;  %6187 = vmatprep.subr.mxu1 %v6545_v2 }
  0xfb   :  { %6153 = vmatpush3.msra.mxu0 %v8546_v4  ;;  %6188 = vmatpush3.msra.mxu1 %v8547_v5 }
  0xfc   :  { %6154 = vmatprep.subr.mxu0 %v6545_v2  ;;  %6189 = vmatprep.subr.mxu1 %v6545_v2 }
  0xfd   :  { %6155 = vmatpush3.msra.mxu0 %v8548_v6  ;;  %6190 = vmatpush3.msra.mxu1 %v8549_v7 }
  0xfe   :  { %6156 = vmatprep.subr.mxu0 %v6545_v2  ;;  %6191 = vmatprep.subr.mxu1 %v6545_v2 }
  0xff   :  { %6157 = vmatpush3.msra.mxu0 %v8550_v8  ;;  %6192 = vmatpush3.msra.mxu1 %v8551_v9 }
 0x100   :  { %6158 = vmatprep.subr.mxu0 %v6545_v2  ;;  %6193 = vmatprep.subr.mxu1 %v6545_v2 }
 0x101   :  { %6159 = vmatpush3.msra.mxu0 %v8552_v10  ;;  %6194 = vmatpush3.msra.mxu1 %v8553_v11 }
 0x102   :  { %6160 = vmatprep.subr.mxu0 %v6545_v2  ;;  %6195 = vmatprep.subr.mxu1 %v6545_v2 }
 0x103   :  { %6161 = vmatpush3.msra.mxu0 %v8554_v12  ;;  %6196 = vmatpush3.msra.mxu1 %v8555_v13 }
 0x104   :  { %6162 = vmatprep.subr.mxu0 %v6545_v2  ;;  %6197 = vmatprep.subr.mxu1 %v6545_v2  ;;  %v413_v14 = vpop.f32.mrf.mxu0  ;;  %v483_v15 = vpop.f32.mrf.mxu1 }
 0x105   :  { %6163 = vmatpush3.msra.mxu0 %v8556_v16  ;;  %6198 = vmatpush3.msra.mxu1 %v8557_v17 }
 0x106   :  { %6164 = vmatprep.subr.mxu0 %v6545_v2  ;;  %6199 = vmatprep.subr.mxu1 %v6545_v2  ;;  %v5791_v18 = vpop.f32.mrf.mxu1  ;;  %v5756_v19 = vpop.f32.mrf.mxu0 }
 0x107   :  { %6165 = vmatpush3.msra.mxu0 %v8558_v20  ;;  %6200 = vmatpush3.msra.mxu1 %v8559_v21 }
 0x108   :  { %6166 = vmatprep.subr.mxu0 %v6545_v2  ;;  %6201 = vmatprep.subr.mxu1 %v6545_v2 }
 0x109   :  { %6167 = vmatpush3.msra.mxu0 %v8560_v22  ;;  %6202 = vmatpush3.msra.mxu1 %v8561_v23 }
 0x10a   :  { %6168 = vmatprep.subr.mxu0 %v6545_v2  ;;  %6203 = vmatprep.subr.mxu1 %v6545_v2 }
 0x10b   :  { %6169 = vmatpush3.msra.mxu0 %v7460_v63  ;;  %6204 = vmatpush3.msra.mxu1 %v7465_v62  ;;  %v7810_v63 = vadd.f32 %v7801_v24, %v413_v14 }
 0x10c   :  { %6170 = vmatprep.subr.mxu0 %v6545_v2  ;;  %6205 = vmatprep.subr.mxu1 %v6545_v2 }
 0x10d   :  { %6171 = vmatpush3.msra.mxu0 %v7474_v59  ;;  %6206 = vmatpush3.msra.mxu1 %v7479_v58  ;;  %v5198_v58 = vld [vmem:[%s8360_s2 + $0x3] ss:$0 sm:$0xff] }
 0x10e   :  { %6172 = vmatprep.subr.mxu0 %v6545_v2  ;;  %6207 = vmatprep.subr.mxu1 %v6545_v2  ;;  %v7829_v59 = vadd.f32 %v5198_v58, %v483_v15 }
 0x10f   :  { %6173 = vmatpush3.msra.mxu0 %v7488_v61  ;;  %6174 = vmatprep.mubr.msk.f32.mxu0 %vm6546_vm0, %v6545_v2  ;;  %v7843_v61 = vld [vmem:[%s8360_s2 + $0x5] ss:$0 sm:$0xff] }
 0x110   :  { %6208 = vmatpush3.msra.mxu1 %v7495_v60  ;;  %6209 = vmatprep.mubr.msk.f32.mxu1 %vm6546_vm0, %v6545_v2  ;;  %v7838_v60 = vld [vmem:[%s8360_s2 + $0x4] ss:$0 sm:$0xff]  ;;  %s6548_s2 = smov 120  }
 0x111   :  { %6175 = vmatmul.mubr.f32.vlgmr.msra.gmra.mxu0 %v7572_v0  ;;  %6210 = vmatmul.mubr.f32.vlgmr.msra.gmra.mxu1 %v7572_v0 }
 0x112   :  { %1483 = vrot.lane.b32.xlu1 %v7810_v63, %s6547_s30  ;;  %6212 = vmatprep.subr.mxu0 %v6545_v2 }
 0x113   :  { %6214 = vmatprep.mubr.msk.f32.mxu0 %vm6546_vm0, %v6545_v2  ;;  %6217 = vmatprep.subr.mxu1 %v6545_v2 }
 0x114   :  { %6219 = vmatprep.mubr.msk.f32.mxu1 %vm6546_vm0, %v6545_v2 }
 0x116   :  { %1560 = vrot.lane.b32.xlu1 %v7829_v59, %s6547_s30 }
 0x126   :  { %v553_v62 = vpop.f32.mrf.mxu0  ;;  %v623_v0 = vpop.f32.mrf.mxu1 }
 0x127   :  { %v7846_v25 = vadd.f32 %v7838_v60, %v553_v62  ;;  %v7849_v26 = vadd.f32 %v7843_v61, %v623_v0 }
 0x128   :  { %v5861_v27 = vpop.f32.mrf.mxu1  ;;  %v5826_v28 = vpop.f32.mrf.mxu0 }
 0x129   :  { %1714 = vrot.lane.b32.xlu1 %v7849_v26, %s6547_s30  ;;  %1637 = vrot.lane.b32.xlu0 %v7846_v25, %s6547_s30 }
 0x148   :  { %v693_v31 = vpop.f32.mrf.mxu0  ;;  %v763_v32 = vpop.f32.mrf.mxu1 }
 0x149   :  { %v7866_v33 = vadd.f32 %v7858_v29, %v693_v31  ;;  %v7869_v34 = vadd.f32 %v7863_v30, %v763_v32 }
 0x14a   :  { %v5931_v35 = vpop.f32.mrf.mxu1  ;;  %v5896_v36 = vpop.f32.mrf.mxu0 }
 0x14b   :  { %1868 = vrot.lane.b32.xlu1 %v7869_v34, %s6547_s30  ;;  %1791 = vrot.lane.b32.xlu0 %v7866_v33, %s6547_s30 }
 0x165   :  { %v1329_v37 = vpop.permute.xlu0 %1328 }
 0x166   :  { %6213 = vmatpush3.xpose.msk.msra.mxu0 %vm1330_vm1, %v1329_v37 }
 0x167   :  { %6222 = vmatprep.subr.mxu0 %v6545_v2 }
 0x169   :  { %6215 = vmatmul.mubr.msk.f32.vlgmr.msra.gmra.mxu0 %vm1330_vm1, %v7728_v47  ;;  %v1407_v38 = vpop.permute.xlu0 %1406 }
 0x16a   :  { %6218 = vmatpush3.xpose.msk.msra.mxu1 %vm1330_vm1, %v1407_v38  ;;  %v833_v39 = vpop.f32.mrf.mxu0  ;;  %v903_v40 = vpop.f32.mrf.mxu1  ;;  %6224 = vmatprep.mubr.msk.f32.mxu0 %vm6546_vm0, %v6545_v2 }
 0x16b   :  { %v7883_v41 = vadd.f32 %v7720_v45, %v833_v39  ;;  %v7886_v42 = vadd.f32 %v7739_v50, %v903_v40  ;;  %6227 = vmatprep.subr.mxu1 %v6545_v2 }
 0x16c   :  { %v6001_v43 = vpop.f32.mrf.mxu1  ;;  %v5966_v44 = vpop.f32.mrf.mxu0 }
 0x16d   :  { %6220 = vmatmul.mubr.msk.f32.vlgmr.msra.gmra.mxu1 %vm1330_vm1, %v7749_v54  ;;  %2022 = vrot.lane.b32.xlu1 %v7886_v42, %s6547_s30 }
 0x16e   :  { %1945 = vrot.lane.b32.xlu0 %v7883_v41, %s6547_s30  ;;  %6229 = vmatprep.mubr.msk.f32.mxu1 %vm6546_vm0, %v6545_v2 }
 0x184   :  { %v1484_v45 = vpop.permute.xlu1 %1483 }
 0x185   :  { %6223 = vmatpush3.xpose.msk.msra.mxu0 %vm1330_vm1, %v1484_v45 }
 0x186   :  { %6232 = vmatprep.subr.mxu0 %v6545_v2 }
 0x188   :  { %6225 = vmatmul.mubr.msk.f32.vlgmr.msra.gmra.mxu0 %vm1330_vm1, %v7810_v63  ;;  %v1561_v46 = vpop.permute.xlu1 %1560 }
 0x189   :  { %6228 = vmatpush3.xpose.msk.msra.mxu1 %vm1330_vm1, %v1561_v46  ;;  %6234 = vmatprep.mubr.msk.f32.mxu0 %vm6546_vm0, %v6545_v2 }
 0x18a   :  { %6237 = vmatprep.subr.mxu1 %v6545_v2 }
 0x18c   :  { %6230 = vmatmul.mubr.msk.f32.vlgmr.msra.gmra.mxu1 %vm1330_vm1, %v7829_v59  ;;  %v973_v48 = vpop.f32.mrf.mxu0  ;;  %v1043_v49 = vpop.f32.mrf.mxu1 }
 0x18d   :  { %v7908_v50 = vadd.f32 %v7801_v24, %v973_v48  ;;  %v7910_v51 = vadd.f32 %v5198_v58, %v1043_v49  ;;  %6239 = vmatprep.mubr.msk.f32.mxu1 %vm6546_vm0, %v6545_v2 }
 0x18e   :  { %v6071_v52 = vpop.f32.mrf.mxu1  ;;  %v6036_v53 = vpop.f32.mrf.mxu0 }
 0x18f   :  { %2176 = vrot.lane.b32.xlu1 %v7910_v51, %s6547_s30  ;;  %2099 = vrot.lane.b32.xlu0 %v7908_v50, %s6547_s30 }
 0x19b   :  { %v1715_v55 = vpop.permute.xlu1 %1714  ;;  %v1638_v56 = vpop.permute.xlu0 %1637 }
 0x19c   :  { %6233 = vmatpush3.xpose.msk.msra.mxu0 %vm1330_vm1, %v1638_v56  ;;  %6238 = vmatpush3.xpose.msk.msra.mxu1 %vm1330_vm1, %v1715_v55 }
 0x19d   :  { %6247 = vmatprep.subr.mxu1 %v6545_v2  ;;  %6242 = vmatprep.subr.mxu0 %v6545_v2 }
 0x19f   :  { %6235 = vmatmul.mubr.msk.f32.vlgmr.msra.gmra.mxu0 %vm1330_vm1, %v7846_v25  ;;  %6240 = vmatmul.mubr.msk.f32.vlgmr.msra.gmra.mxu1 %vm1330_vm1, %v7849_v26 }
 0x1a0   :  { %6244 = vmatprep.mubr.msk.f32.mxu0 %vm6546_vm0, %v6545_v2  ;;  %6249 = vmatprep.mubr.msk.f32.mxu1 %vm6546_vm0, %v6545_v2 }
 0x1ae   :  { %v1113_v57 = vpop.f32.mrf.mxu0  ;;  %v1183_v1 = vpop.f32.mrf.mxu1 }
 0x1af   :  { %v7931_v3 = vadd.f32 %v7838_v60, %v1113_v57  ;;  %v7934_v4 = vadd.f32 %v7843_v61, %v1183_v1 }
 0x1b0   :  { %v6141_v5 = vpop.f32.mrf.mxu1  ;;  %v6106_v6 = vpop.f32.mrf.mxu0 }
 0x1b1   :  { %2330 = vrot.lane.b32.xlu1 %v7934_v4, %s6547_s30  ;;  %2253 = vrot.lane.b32.xlu0 %v7931_v3, %s6547_s30 }
 0x1bd   :  { %v1869_v7 = vpop.permute.xlu1 %1868  ;;  %v1792_v8 = vpop.permute.xlu0 %1791 }
 0x1be   :  { %6243 = vmatpush3.xpose.msk.msra.mxu0 %vm1330_vm1, %v1792_v8  ;;  %6248 = vmatpush3.xpose.msk.msra.mxu1 %vm1330_vm1, %v1869_v7 }
 0x1bf   :  { %6257 = vmatprep.subr.mxu1 %v6545_v2  ;;  %6252 = vmatprep.subr.mxu0 %v6545_v2 }
 0x1c1   :  { %6245 = vmatmul.mubr.msk.f32.vlgmr.msra.gmra.mxu0 %vm1330_vm1, %v7866_v33  ;;  %6250 = vmatmul.mubr.msk.f32.vlgmr.msra.gmra.mxu1 %vm1330_vm1, %v7869_v34 }
 0x1c2   :  { %6254 = vmatprep.mubr.msk.f32.mxu0 %vm6546_vm0, %v6545_v2  ;;  %6259 = vmatprep.mubr.msk.f32.mxu1 %vm6546_vm0, %v6545_v2 }
 0x1d1   :  { %v1253_v9 = vpop.f32.mrf.mxu0  ;;  %v1323_v10 = vpop.f32.mrf.mxu1 }
 0x1d2   :  { %v7953_v11 = vadd.f32 %v7858_v29, %v1253_v9  ;;  %v7956_v12 = vadd.f32 %v7863_v30, %v1323_v10 }
 0x1d3   :  { %v6176_v13 = vpop.f32.mrf.mxu0  ;;  %v6211_v14 = vpop.f32.mrf.mxu1 }
 0x1d4   :  { %2484 = vrot.lane.b32.xlu1 %v7956_v12, %s6547_s30  ;;  %2407 = vrot.lane.b32.xlu0 %v7953_v11, %s6547_s30 }
 0x1df   :  { %v2023_v15 = vpop.permute.xlu1 %2022 }
 0x1e0   :  { %v1946_v16 = vpop.permute.xlu0 %1945  ;;  %6258 = vmatpush3.xpose.msk.msra.mxu1 %vm1330_vm1, %v2023_v15 }
 0x1e1   :  { %6253 = vmatpush3.xpose.msk.msra.mxu0 %vm1330_vm1, %v1946_v16  ;;  %6267 = vmatprep.subr.mxu1 %v6545_v2 }
 0x1e2   :  { %6262 = vmatprep.subr.mxu0 %v6545_v2 }
 0x1e3   :  { %6260 = vmatmul.mubr.msk.f32.vlgmr.msra.gmra.mxu1 %vm1330_vm1, %v7886_v42 }
 0x1e4   :  { %6255 = vmatmul.mubr.msk.f32.vlgmr.msra.gmra.mxu0 %vm1330_vm1, %v7883_v41  ;;  %6269 = vmatprep.mubr.msk.f32.mxu1 %vm6546_vm0, %v6545_v2 }
 0x1e5   :  { %6264 = vmatprep.mubr.msk.f32.mxu0 %vm6546_vm0, %v6545_v2 }
 0x201   :  { %v2177_v17 = vpop.permute.xlu1 %2176  ;;  %v2100_v18 = vpop.permute.xlu0 %2099 }
 0x202   :  { %6263 = vmatpush3.xpose.msk.msra.mxu0 %vm1330_vm1, %v2100_v18  ;;  %6268 = vmatpush3.xpose.msk.msra.mxu1 %vm1330_vm1, %v2177_v17 }
 0x203   :  { %6277 = vmatprep.subr.mxu1 %v6545_v2  ;;  %6272 = vmatprep.subr.mxu0 %v6545_v2 }
 0x205   :  { %6265 = vmatmul.mubr.msk.f32.vlgmr.msra.gmra.mxu0 %vm1330_vm1, %v7908_v50  ;;  %6270 = vmatmul.mubr.msk.f32.vlgmr.msra.gmra.mxu1 %vm1330_vm1, %v7910_v51 }
 0x206   :  { %6274 = vmatprep.mubr.msk.f32.mxu0 %vm6546_vm0, %v6545_v2  ;;  %6279 = vmatprep.mubr.msk.f32.mxu1 %vm6546_vm0, %v6545_v2 }
 0x223   :  { %v2331_v19 = vpop.permute.xlu1 %2330  ;;  %v2254_v20 = vpop.permute.xlu0 %2253 }
 0x224   :  { %6273 = vmatpush3.xpose.msk.msra.mxu0 %vm1330_vm1, %v2254_v20  ;;  %6278 = vmatpush3.xpose.msk.msra.mxu1 %vm1330_vm1, %v2331_v19 }
 0x225   :  { %6287 = vmatprep.subr.mxu1 %v6545_v2  ;;  %6282 = vmatprep.subr.mxu0 %v6545_v2 }
 0x227   :  { %6275 = vmatmul.mubr.msk.f32.vlgmr.msra.gmra.mxu0 %vm1330_vm1, %v7931_v3  ;;  %6280 = vmatmul.mubr.msk.f32.vlgmr.msra.gmra.mxu1 %vm1330_vm1, %v7934_v4 }
 0x228   :  { %6284 = vmatprep.mubr.msk.f32.mxu0 %vm6546_vm0, %v6545_v2  ;;  %6289 = vmatprep.mubr.msk.f32.mxu1 %vm6546_vm0, %v6545_v2 }
 0x229   :  { %v1401_v21 = vpop.f32.mrf.mxu0 }
 0x22a   :  { %v2561_v22 = vsel %vm2560_vm2, %v1401_v21, -inf }
 0x22b   :  { %2562 = vmax.xlane.f32.xlu0 %v2561_v22  ;;  %v6216_v23 = vpop.f32.mrf.mxu0 }
 0x22d   :  { %v1478_v24 = vpop.f32.mrf.mxu1 }
 0x22e   :  { %v2564_v58 = vsel %vm2560_vm2, %v1478_v24, -inf }
 0x22f   :  { %v6221_v60 = vpop.f32.mrf.mxu1  ;;  %2565 = vmax.xlane.f32.xlu1 %v2564_v58 }
 0x246   :  { %v2485_v61 = vpop.permute.xlu1 %2484  ;;  %v2408_v62 = vpop.permute.xlu0 %2407 }
 0x247   :  { %6283 = vmatpush3.xpose.msk.msra.mxu0 %vm1330_vm1, %v2408_v62  ;;  %6288 = vmatpush3.xpose.msk.msra.mxu1 %vm1330_vm1, %v2485_v61 }
 0x248   :  { %v8002_v0 = vpop.f32.mrf.mxu0  ;;  %6297 = vmatprep.subr.mxu1 %v6545_v2  ;;  %6292 = vmatprep.subr.mxu0 %v6545_v2 }
 0x249   :  { %v2567_v27 = vsel %vm2560_vm2, %v8002_v0, -inf }
 0x24a   :  { %6285 = vmatmul.mubr.msk.f32.vlgmr.msra.gmra.mxu0 %vm1330_vm1, %v7953_v11  ;;  %6290 = vmatmul.mubr.msk.f32.vlgmr.msra.gmra.mxu1 %vm1330_vm1, %v7956_v12  ;;  %v6226_v28 = vpop.f32.mrf.mxu0 }
 0x24b   :  { %2568 = vmax.xlane.f32.xlu0 %v2567_v27  ;;  %6299 = vmatprep.mubr.msk.f32.mxu1 %vm6546_vm0, %v6545_v2 }
 0x24c   :  { %v1632_v29 = vpop.f32.mrf.mxu1  ;;  %6294 = vmatprep.mubr.msk.f32.mxu0 %vm6546_vm0, %v6545_v2 }
 0x24d   :  { %v2570_v30 = vsel %vm2560_vm2, %v1632_v29, -inf }
 0x24e   :  { %v6231_v31 = vpop.f32.mrf.mxu1 }
 0x24f   :  { %2571 = vmax.xlane.f32.xlu0 %v2570_v30 }
 0x25f   :  { %v8017_v32 = vpop.f32.mrf.mxu0  ;;  %v8019_v35 = vpop.f32.mrf.mxu1 }
 0x260   :  { %v2576_v36 = vsel %vm2560_vm2, %v8019_v35, -inf  ;;  %v2573_v37 = vsel %vm2560_vm2, %v8017_v32, -inf }
 0x261   :  { %v6241_v38 = vpop.f32.mrf.mxu1  ;;  %2577 = vmax.xlane.f32.xlu0 %v2576_v36  ;;  %2574 = vmax.xlane.f32.xlu1 %v2573_v37  ;;  %v6236_v39 = vpop.f32.mrf.mxu0 }
 0x281   :  { %v8025_v40 = vpop.f32.mrf.mxu0  ;;  %v8027_v43 = vpop.f32.mrf.mxu1 }
 0x282   :  { %v2582_v44 = vsel %vm2560_vm2, %v8027_v43, -inf  ;;  %v2579_v45 = vsel %vm2560_vm2, %v8025_v40, -inf }
 0x283   :  { %v6251_v46 = vpop.f32.mrf.mxu1  ;;  %2583 = vmax.xlane.f32.xlu0 %v2582_v44  ;;  %2580 = vmax.xlane.f32.xlu1 %v2579_v45  ;;  %v6246_v48 = vpop.f32.mrf.mxu0 }
 0x2a3   :  { %v8033_v49 = vpop.f32.mrf.mxu1 }
 0x2a4   :  { %v8035_v52 = vpop.f32.mrf.mxu0  ;;  %v2588_v53 = vsel %vm2560_vm2, %v8033_v49, -inf }
 0x2a5   :  { %v6261_v55 = vpop.f32.mrf.mxu1  ;;  %2589 = vmax.xlane.f32.xlu0 %v2588_v53  ;;  %v2585_v56 = vsel %vm2560_vm2, %v8035_v52, -inf }
 0x2a6   :  { %2586 = vmax.xlane.f32.xlu1 %v2585_v56  ;;  %v6256_v57 = vpop.f32.mrf.mxu0 }
 0x2b4   :  { %v2563_v1 = vpop.xlane.xlu0 %2562 }
 0x2b5   :  { %v2609_v5 = vsub.f32 %v1401_v21, %v2563_v1 }
 0x2b7   :  { %v2625_v6 = vmul.f32 1.442695, %v2609_v5 }
 0x2b8   :  { %v2566_v7 = vpop.xlane.xlu1 %2565 }
 0x2b9   :  { %6459 = vpow2.f32 %v2625_v6  ;;  %v2610_v8 = vsub.f32 %v1478_v24, %v2566_v7 }
 0x2bb   :  { %v2627_v9 = vmul.f32 1.442695, %v2610_v8 }
 0x2bd   :  { %6461 = vpow2.f32 %v2627_v9 }
 0x2c5   :  { %v8041_v10 = vpop.f32.mrf.mxu0  ;;  %v8043_v13 = vpop.f32.mrf.mxu1 }
 0x2c6   :  { %v8045_v14 = vpop.eup %6459  ;;  %v2591_v18 = vsel %vm2560_vm2, %v8041_v10, -inf  ;;  %v2594_v21 = vsel %vm2560_vm2, %v8043_v13, -inf }
 0x2c7   :  { %v2657_v15 = vsel %vm2560_vm2, %v8045_v14, 0.0  ;;  %v6266_v16 = vpop.f32.mrf.mxu0  ;;  %v6271_v17 = vpop.f32.mrf.mxu1 }
 0x2c8   :  { %2658 = vadd.xlane.f32.xlu1 %v2657_v15 }
 0x2ca   :  { %v8051_v19 = vpop.eup %6461 }
 0x2cb   :  { %v2660_v20 = vsel %vm2560_vm2, %v8051_v19, 0.0 }
 0x2cc   :  { %2661 = vadd.xlane.f32.xlu0 %v2660_v20  ;;  %2592 = vmax.xlane.f32.xlu1 %v2591_v18 }
 0x2d0   :  { %2595 = vmax.xlane.f32.xlu0 %v2594_v21 }
 0x2d4   :  { %v2569_v22 = vpop.xlane.xlu0 %2568 }
 0x2d5   :  { %v2611_v39 = vsub.f32 %v8002_v0, %v2569_v22 }
 0x2d7   :  { %v2629_v45 = vmul.f32 1.442695, %v2611_v39 }
 0x2d8   :  { %v2572_v23 = vpop.xlane.xlu0 %2571 }
 0x2d9   :  { %v2612_v24 = vsub.f32 %v1632_v29, %v2572_v23 }
 0x2db   :  { %v2631_v58 = vmul.f32 1.442695, %v2612_v24 }
 0x2dd   :  { %6463 = vpow2.f32 %v2631_v58 }
 0x2e7   :  { %v8057_v60 = vpop.f32.mrf.mxu0  ;;  %v8059_v61 = vpop.f32.mrf.mxu1 }
 0x2e8   :  { %v2600_v62 = vsel %vm2560_vm2, %v8059_v61, -inf  ;;  %v2597_v27 = vsel %vm2560_vm2, %v8057_v60, -inf }
 0x2e9   :  { %v6281_v28 = vpop.f32.mrf.mxu1  ;;  %2601 = vmax.xlane.f32.xlu0 %v2600_v62  ;;  %2598 = vmax.xlane.f32.xlu1 %v2597_v27  ;;  %v6276_v30 = vpop.f32.mrf.mxu0 }
 0x2ea   :  { %v8065_v31 = vpop.eup %6463  ;;  %v2578_v36 = vpop.xlane.xlu0 %2577 }
 0x2eb   :  { %v2614_v29 = vsub.f32 %v8019_v35, %v2578_v36  ;;  %v2666_v37 = vsel %vm2560_vm2, %v8065_v31, 0.0  ;;  %v2575_v44 = vpop.xlane.xlu1 %2574 }
 0x2ec   :  { %v2613_v46 = vsub.f32 %v8017_v32, %v2575_v44 }
 0x2ed   :  { %2667 = vadd.xlane.f32.xlu0 %v2666_v37  ;;  %v2635_v38 = vmul.f32 1.442695, %v2614_v29 }
 0x2ee   :  { %v2633_v35 = vmul.f32 1.442695, %v2613_v46 }
 0x2ef   :  { %6465 = vpow2.f32 %v2635_v38 }
 0x2f0   :  { %6467 = vpow2.f32 %v2629_v45 }
 0x2f1   :  { %6469 = vpow2.f32 %v2633_v35 }
 0x2fc   :  { %v8072_v48 = vpop.eup %6465 }
 0x2fd   :  { %v2672_v53 = vsel %vm2560_vm2, %v8072_v48, 0.0  ;;  %v8082_v57 = vpop.eup %6467 }
 0x2fe   :  { %2673 = vadd.xlane.f32.xlu0 %v2672_v53  ;;  %v2663_v5 = vsel %vm2560_vm2, %v8082_v57, 0.0  ;;  %v8086_v6 = vpop.eup %6469 }
 0x2ff   :  { %v2669_v7 = vsel %vm2560_vm2, %v8086_v6, 0.0 }
 0x30a   :  { %v8076_v55 = vpop.f32.mrf.mxu0  ;;  %v8078_v56 = vpop.f32.mrf.mxu1 }
 0x30b   :  { %v2603_v0 = vsel %vm2560_vm2, %v8076_v55, -inf }
 0x30c   :  { %v6291_v1 = vpop.f32.mrf.mxu1  ;;  %2604 = vmax.xlane.f32.xlu1 %v2603_v0  ;;  %v6286_v32 = vpop.f32.mrf.mxu0 }
 0x30d   :  { %v2584_v18 = vpop.xlane.xlu0 %2583 }
 0x30e   :  { %v2616_v24 = vsub.f32 %v8027_v43, %v2584_v18 }
 0x310   :  { %2664 = vadd.xlane.f32.xlu1 %v2663_v5 }
 0x314   :  { %2670 = vadd.xlane.f32.xlu1 %v2669_v7  ;;  %2813 = vrot.lane.b32.xlu0 %v7749_v54, %s6548_s2  ;;  %v2581_v54 = vpop.xlane.xlu1 %2580 }
 0x318   :  { %2889 = vrot.lane.b32.xlu0 %v7810_v63, %s6548_s2  ;;  %v2615_v63 = vsub.f32 %v8025_v40, %v2581_v54 }
 0x31c   :  { %2965 = vrot.lane.b32.xlu0 %v7829_v59, %s6548_s2 }
 0x320   :  { %3041 = vrot.lane.b32.xlu0 %v7846_v25, %s6548_s2  ;;  %v2637_v25 = vmul.f32 1.442695, %v2615_v63 }
 0x322   :  { %6471 = vpow2.f32 %v2637_v25 }
 0x324   :  { %3117 = vrot.lane.b32.xlu0 %v7849_v26, %s6548_s2 }
 0x325   :  { %2737 = vrot.lane.b32.xlu1 %v7728_v47, %s6548_s2 }
 0x328   :  { %3193 = vrot.lane.b32.xlu0 %v7866_v33, %s6548_s2  ;;  %v2606_v33 = vsel %vm2560_vm2, %v8078_v56, -inf }
 0x329   :  { %3421 = vrot.lane.b32.xlu1 %v7886_v42, %s6548_s2 }
 0x32c   :  { %3269 = vrot.lane.b32.xlu0 %v7869_v34, %s6548_s2 }
 0x32e   :  { %v2590_v21 = vpop.xlane.xlu0 %2589 }
 0x32f   :  { %v2587_v59 = vpop.xlane.xlu1 %2586  ;;  %v8110_v47 = vpop.eup %6471  ;;  %v2618_v58 = vsub.f32 %v8033_v49, %v2590_v21 }
 0x330   :  { %v2617_v8 = vsub.f32 %v8035_v52, %v2587_v59  ;;  %v2675_v42 = vsel %vm2560_vm2, %v8110_v47, 0.0 }
 0x331   :  { %v2643_v27 = vmul.f32 1.442695, %v2618_v58 }
 0x332   :  { %v2641_v26 = vmul.f32 1.442695, %v2617_v8 }
 0x334   :  { %6473 = vpow2.f32 %v2641_v26 }
 0x341   :  { %v8116_v34 = vpop.eup %6473 }
 0x342   :  { %v2681_v40 = vsel %vm2560_vm2, %v8116_v34, 0.0 }
 0x34b   :  { %2607 = vmax.xlane.f32.xlu0 %v2606_v33 }
 0x34d   :  { %2676 = vadd.xlane.f32.xlu1 %v2675_v42 }
 0x351   :  { %2682 = vadd.xlane.f32.xlu1 %v2681_v40  ;;  %v2659_v52 = vpop.xlane.xlu1 %2658 }
 0x355   :  { %v2593_v9 = vpop.xlane.xlu1 %2592 }
 0x356   :  { %v2619_v15 = vsub.f32 %v8041_v10, %v2593_v9  ;;  %v2662_v10 = vpop.xlane.xlu0 %2661 }
 0x358   :  { %v2645_v16 = vmul.f32 1.442695, %v2619_v15 }
 0x35a   :  { %6475 = vpow2.f32 %v2645_v16  ;;  %v2596_v23 = vpop.xlane.xlu0 %2595 }
 0x361   :  { %3345 = vrot.lane.b32.xlu0 %v7883_v41, %s6548_s2 }
 0x365   :  { %3497 = vrot.lane.b32.xlu0 %v7908_v50, %s6548_s2 }
 0x367   :  { %v8125_v17 = vpop.eup %6475 }
 0x368   :  { %v2687_v20 = vsel %vm2560_vm2, %v8125_v17, 0.0 }
 0x369   :  { %2688 = vadd.xlane.f32.xlu1 %v2687_v20  ;;  %3573 = vrot.lane.b32.xlu0 %v7910_v51, %s6548_s2  ;;  %v2639_v51 = vmul.f32 1.442695, %v2616_v24 }
 0x36d   :  { %3649 = vrot.lane.b32.xlu0 %v7931_v3, %s6548_s2  ;;  %v2620_v3 = vsub.f32 %v8043_v13, %v2596_v23 }
 0x36f   :  { %v2647_v30 = vmul.f32 1.442695, %v2620_v3 }
 0x371   :  { %3725 = vrot.lane.b32.xlu0 %v7934_v4, %s6548_s2 }
 0x372   :  { %v2599_v41 = vpop.xlane.xlu1 %2598  ;;  %v2602_v62 = vpop.xlane.xlu0 %2601 }
 0x373   :  { %v2621_v50 = vsub.f32 %v8057_v60, %v2599_v41  ;;  %v2622_v4 = vsub.f32 %v8059_v61, %v2602_v62 }
 0x375   :  { %v2649_v22 = vmul.f32 1.442695, %v2621_v50  ;;  %v2651_v36 = vmul.f32 1.442695, %v2622_v4 }
 0x376   :  { %v2668_v28 = vpop.xlane.xlu0 %2667 }
 0x377   :  { %6477 = vpow2.f32 %v2649_v22 }
 0x378   :  { %6479 = vrcp.f32 %v2662_v10 }
 0x379   :  { %6481 = vpow2.f32 %v2639_v51 }
 0x37a   :  { %6483 = vpow2.f32 %v2643_v27 }
 0x37b   :  { %6485 = vrcp.f32 %v2668_v28 }
 0x37c   :  { %6487 = vpow2.f32 %v2647_v30 }
 0x37d   :  { %6489 = vpow2.f32 %v2651_v36 }
 0x384   :  { %v8140_v60 = vpop.eup %6477 }
 0x385   :  { %v2693_v43 = vsel %vm2560_vm2, %v8140_v60, 0.0  ;;  %v6480_v29 = vpop.eup %6479 }
 0x386   :  { %2694 = vadd.xlane.f32.xlu1 %v2693_v43  ;;  %v2722_v13 = vmul.f32 %v6480_v29, %v8051_v19  ;;  %v8145_v38 = vpop.eup %6481 }
 0x387   :  { %v2674_v49 = vpop.xlane.xlu0 %2673  ;;  %v8151_v61 = vpop.eup %6483  ;;  %v2678_v44 = vsel %vm2560_vm2, %v8145_v38, 0.0 }
 0x388   :  { %6491 = vrcp.f32 %v2674_v49  ;;  %v6486_v45 = vpop.eup %6485  ;;  %v2684_v46 = vsel %vm2560_vm2, %v8151_v61, 0.0 }
 0x389   :  { %6493 = vrcp.f32 %v2659_v52  ;;  %v2724_v53 = vmul.f32 %v6486_v45, %v8065_v31  ;;  %v8158_v35 = vpop.eup %6487 }
 0x38a   :  { %v8165_v32 = vpop.eup %6489  ;;  %v2690_v31 = vsel %vm2560_vm2, %v8158_v35, 0.0 }
 0x38b   :  { %v2814_v37 = vpop.permute.xlu0 %2813  ;;  %v2696_v25 = vsel %vm2560_vm2, %v8165_v32, 0.0 }
 0x38c   :  { %6298 = vmatpush3.msra.mxu1 %v2814_v37 }
 0x38d   :  { %6300 = vmatmul.mubr.msk.f32.vlgmr.msra.gmra.mxu1 %vm2560_vm2, %v2722_v13  ;;  %6307 = vmatprep.subr.mxu1 %v6545_v2 }
 0x38e   :  { %6309 = vmatprep.mubr.msk.f32.mxu1 %vm6546_vm0, %v6545_v2 }
 0x38f   :  { %v2890_v39 = vpop.permute.xlu0 %2889 }
 0x390   :  { %2679 = vadd.xlane.f32.xlu0 %v2678_v44 }
 0x393   :  { %v2966_v19 = vpop.permute.xlu0 %2965 }
 0x394   :  { %2685 = vadd.xlane.f32.xlu0 %v2684_v46  ;;  %6308 = vmatpush3.msra.mxu1 %v2966_v19 }
 0x395   :  { %v2605_v0 = vpop.xlane.xlu1 %2604  ;;  %6310 = vmatmul.mubr.msk.f32.vlgmr.msra.gmra.mxu1 %vm2560_vm2, %v2724_v53  ;;  %6317 = vmatprep.subr.mxu1 %v6545_v2  ;;  %v6492_v7 = vpop.eup %6491 }
 0x396   :  { %v2623_v1 = vsub.f32 %v8076_v55, %v2605_v0  ;;  %6319 = vmatprep.mubr.msk.f32.mxu1 %vm6546_vm0, %v6545_v2  ;;  %v2726_v55 = vmul.f32 %v6492_v7, %v8072_v48  ;;  %v6494_v26 = vpop.eup %6493 }
 0x397   :  { %v3042_v5 = vpop.permute.xlu0 %3041  ;;  %v2721_v40 = vmul.f32 %v6494_v26, %v8045_v14 }
 0x398   :  { %v2653_v54 = vmul.f32 1.442695, %v2623_v1  ;;  %2691 = vadd.xlane.f32.xlu0 %v2690_v31 }
 0x399   :  { %v2665_v63 = vpop.xlane.xlu1 %2664 }
 0x39a   :  { %6495 = vpow2.f32 %v2653_v54 }
 0x39b   :  { %6497 = vrcp.f32 %v2665_v63  ;;  %v3118_v59 = vpop.permute.xlu0 %3117 }
 0x39c   :  { %2697 = vadd.xlane.f32.xlu0 %v2696_v25  ;;  %6318 = vmatpush3.msra.mxu1 %v3118_v59 }
 0x39d   :  { %v2671_v8 = vpop.xlane.xlu1 %2670  ;;  %6320 = vmatmul.mubr.msk.f32.vlgmr.msra.gmra.mxu1 %vm2560_vm2, %v2726_v55  ;;  %6327 = vmatprep.subr.mxu1 %v6545_v2 }
 0x39e   :  { %6499 = vrcp.f32 %v2671_v8  ;;  %6329 = vmatprep.mubr.msk.f32.mxu1 %vm6546_vm0, %v6545_v2 }
 0x39f   :  { %v3194_v33 = vpop.permute.xlu0 %3193 }
 0x3a1   :  { %v2738_v42 = vpop.permute.xlu1 %2737 }
 0x3a2   :  { %6293 = vmatpush3.msra.mxu0 %v2738_v42  ;;  %v3955_v42 = vld [vmem:[%s8361_s3 + $0x8] sm:$0xf] }
 0x3a3   :  { %6295 = vmatmul.mubr.msk.f32.vlgmr.msra.gmra.mxu0 %vm2560_vm2, %v2721_v40  ;;  %6302 = vmatprep.subr.mxu0 %v6545_v2  ;;  %v3270_v48 = vpop.permute.xlu0 %3269  ;;  %v3957_v40 = vld [vmem:[%s8361_s3 + $0x10] sm:$0xf] }
 0x3a4   :  { %6303 = vmatpush3.msra.mxu0 %v2890_v39  ;;  %6304 = vmatprep.mubr.msk.f32.mxu0 %vm6546_vm0, %v6545_v2 }
 0x3a5   :  { %6312 = vmatprep.subr.mxu0 %v6545_v2  ;;  %6328 = vmatpush3.msra.mxu1 %v3270_v48 }
 0x3a6   :  { %6337 = vmatprep.subr.mxu1 %v6545_v2 }
 0x3a7   :  { %v8183_v52 = vpop.eup %6495 }
 0x3a8   :  { %v6498_v9 = vpop.eup %6497  ;;  %v2699_v14 = vsel %vm2560_vm2, %v8183_v52, 0.0 }
 0x3a9   :  { %v2723_v15 = vmul.f32 %v6498_v9, %v8082_v57  ;;  %2700 = vadd.xlane.f32.xlu0 %v2699_v14  ;;  %v3422_v57 = vpop.permute.xlu1 %3421  ;;  %v3954_v9 = vld [vmem:[%s8361_s3 + $0x4] sm:$0xf]  ;;  %v3959_v14 = vld [vmem:[%s8361_s3 + $0x18] sm:$0xf] }
 0x3ab   :  { %v6500_v16 = vpop.eup %6499  ;;  %6305 = vmatmul.mubr.msk.f32.vlgmr.msra.gmra.mxu0 %vm2560_vm2, %v2723_v15  ;;  %v3956_v15 = vld [vmem:[%s8361_s3 + $0xc] sm:$0xf] }
 0x3ac   :  { %6313 = vmatpush3.msra.mxu0 %v3042_v5  ;;  %6314 = vmatprep.mubr.msk.f32.mxu0 %vm6546_vm0, %v6545_v2  ;;  %v2725_v18 = vmul.f32 %v6500_v16, %v8086_v6  ;;  %v3958_v16 = vld [vmem:[%s8361_s3 + $0x14] sm:$0xf] }
 0x3ad   :  { %6322 = vmatprep.subr.mxu0 %v6545_v2 }
 0x3af   :  { %6315 = vmatmul.mubr.msk.f32.vlgmr.msra.gmra.mxu0 %vm2560_vm2, %v2725_v18  ;;  %v3960_v18 = vld [vmem:[%s8361_s3 + $0x1c] sm:$0xf] }
 0x3b0   :  { %6323 = vmatpush3.msra.mxu0 %v3194_v33  ;;  %6324 = vmatprep.mubr.msk.f32.mxu0 %vm6546_vm0, %v6545_v2  ;;  %v3953_v33 = vld [vmem:[%s8361_s3] sm:$0xf] }
 0x3b1   :  { %6332 = vmatprep.subr.mxu0 %v6545_v2 }
 0x3bf   :  { %3877 = vrot.lane.b32.xlu0 %v7956_v12, %s6548_s2 }
 0x3d4   :  { %v2608_v20 = vpop.xlane.xlu0 %2607 }
 0x3d5   :  { %v2624_v21 = vsub.f32 %v8078_v56, %v2608_v20 }
 0x3d6   :  { %v2677_v10 = vpop.xlane.xlu1 %2676 }
 0x3d7   :  { %6501 = vrcp.f32 %v2677_v10  ;;  %v2655_v6 = vmul.f32 1.442695, %v2624_v21 }
 0x3d8   :  { %v3346_v22 = vpop.permute.xlu0 %3345 }
 0x3d9   :  { %6503 = vpow2.f32 %v2655_v6 }
 0x3da   :  { %v2683_v41 = vpop.xlane.xlu1 %2682 }
 0x3db   :  { %6505 = vrcp.f32 %v2683_v41 }
 0x3dc   :  { %v3498_v62 = vpop.permute.xlu0 %3497 }
 0x3e0   :  { %v3574_v51 = vpop.permute.xlu0 %3573 }
 0x3e4   :  { %v6502_v50 = vpop.eup %6501 }
 0x3e5   :  { %v2727_v23 = vmul.f32 %v6502_v50, %v8110_v47 }
 0x3e6   :  { %v8201_v24 = vpop.eup %6503 }
 0x3e7   :  { %6325 = vmatmul.mubr.msk.f32.vlgmr.msra.gmra.mxu0 %vm2560_vm2, %v2727_v23  ;;  %v2702_v12 = vsel %vm2560_vm2, %v8201_v24, 0.0 }
 0x3e8   :  { %v6506_v58 = vpop.eup %6505  ;;  %6333 = vmatpush3.msra.mxu0 %v3346_v22  ;;  %6334 = vmatprep.mubr.msk.f32.mxu0 %vm6546_vm0, %v6545_v2 }
 0x3e9   :  { %6342 = vmatprep.subr.mxu0 %v6545_v2  ;;  %v2729_v56 = vmul.f32 %v6506_v58, %v8116_v34  ;;  %2703 = vadd.xlane.f32.xlu1 %v2702_v12  ;;  %v3650_v34 = vpop.permute.xlu0 %3649 }
 0x3eb   :  { %6335 = vmatmul.mubr.msk.f32.vlgmr.msra.gmra.mxu0 %vm2560_vm2, %v2729_v56 }
 0x3ec   :  { %6343 = vmatpush3.msra.mxu0 %v3498_v62  ;;  %6344 = vmatprep.mubr.msk.f32.mxu0 %vm6546_vm0, %v6545_v2 }
 0x3ed   :  { %6352 = vmatprep.subr.mxu0 %v6545_v2  ;;  %v3726_v4 = vpop.permute.xlu0 %3725 }
 0x3f2   :  { %v2689_v47 = vpop.xlane.xlu1 %2688 }
 0x3f3   :  { %6507 = vrcp.f32 %v2689_v47 }
 0x3fa   :  { %3801 = vrot.lane.b32.xlu1 %v7953_v11, %s6548_s2 }
 0x400   :  { %v6508_v27 = vpop.eup %6507 }
 0x401   :  { %v2731_v3 = vmul.f32 %v6508_v27, %v8125_v17 }
 0x403   :  { %6345 = vmatmul.mubr.msk.f32.vlgmr.msra.gmra.mxu0 %vm2560_vm2, %v2731_v3 }
 0x404   :  { %6353 = vmatpush3.msra.mxu0 %v3650_v34  ;;  %6354 = vmatprep.mubr.msk.f32.mxu0 %vm6546_vm0, %v6545_v2 }
 0x405   :  { %6362 = vmatprep.subr.mxu0 %v6545_v2 }
 0x40f   :  { %v2695_v28 = vpop.xlane.xlu1 %2694 }
 0x410   :  { %6509 = vrcp.f32 %v2695_v28 }
 0x419   :  { %v2680_v30 = vpop.xlane.xlu0 %2679 }
 0x41a   :  { %6511 = vrcp.f32 %v2680_v30 }
 0x41d   :  { %v2686_v36 = vpop.xlane.xlu0 %2685  ;;  %v6510_v11 = vpop.eup %6509 }
 0x41e   :  { %6513 = vrcp.f32 %v2686_v36  ;;  %v2733_v43 = vmul.f32 %v6510_v11, %v8140_v60 }
 0x420   :  { %6355 = vmatmul.mubr.msk.f32.vlgmr.msra.gmra.mxu0 %vm2560_vm2, %v2733_v43 }
 0x421   :  { %v2692_v17 = vpop.xlane.xlu0 %2691  ;;  %6364 = vmatprep.mubr.msk.f32.mxu0 %vm6546_vm0, %v6545_v2 }
 0x422   :  { %6515 = vrcp.f32 %v2692_v17 }
 0x425   :  { %v2698_v49 = vpop.xlane.xlu0 %2697 }
 0x426   :  { %6517 = vrcp.f32 %v2698_v49 }
 0x427   :  { %v6512_v29 = vpop.eup %6511 }
 0x428   :  { %v2728_v37 = vmul.f32 %v6512_v29, %v8145_v38 }
 0x42a   :  { %6330 = vmatmul.mubr.msk.f32.vlgmr.msra.gmra.mxu1 %vm2560_vm2, %v2728_v37 }
 0x42b   :  { %v6514_v13 = vpop.eup %6513  ;;  %6338 = vmatpush3.msra.mxu1 %v3422_v57  ;;  %6339 = vmatprep.mubr.msk.f32.mxu1 %vm6546_vm0, %v6545_v2 }
 0x42c   :  { %6347 = vmatprep.subr.mxu1 %v6545_v2  ;;  %v2730_v60 = vmul.f32 %v6514_v13, %v8151_v61 }
 0x42e   :  { %6340 = vmatmul.mubr.msk.f32.vlgmr.msra.gmra.mxu1 %vm2560_vm2, %v2730_v60 }
 0x42f   :  { %v6516_v39 = vpop.eup %6515  ;;  %6348 = vmatpush3.msra.mxu1 %v3574_v51  ;;  %6349 = vmatprep.mubr.msk.f32.mxu1 %vm6546_vm0, %v6545_v2 }
 0x430   :  { %6357 = vmatprep.subr.mxu1 %v6545_v2  ;;  %v2732_v38 = vmul.f32 %v6516_v39, %v8158_v35 }
 0x432   :  { %v2701_v44 = vpop.xlane.xlu0 %2700  ;;  %6350 = vmatmul.mubr.msk.f32.vlgmr.msra.gmra.mxu1 %vm2560_vm2, %v2732_v38 }
 0x433   :  { %v6518_v45 = vpop.eup %6517  ;;  %6358 = vmatpush3.msra.mxu1 %v3726_v4  ;;  %6359 = vmatprep.mubr.msk.f32.mxu1 %vm6546_vm0, %v6545_v2  ;;  %6519 = vrcp.f32 %v2701_v44 }
 0x434   :  { %6367 = vmatprep.subr.mxu1 %v6545_v2  ;;  %v2734_v61 = vmul.f32 %v6518_v45, %v8165_v32 }
 0x436   :  { %v3878_v19 = vpop.permute.xlu0 %3877  ;;  %6360 = vmatmul.mubr.msk.f32.vlgmr.msra.gmra.mxu1 %vm2560_vm2, %v2734_v61 }
 0x437   :  { %6368 = vmatpush3.msra.mxu1 %v3878_v19  ;;  %6369 = vmatprep.mubr.msk.f32.mxu1 %vm6546_vm0, %v6545_v2 }
 0x438   :  { %6377 = vmatprep.subr.mxu1 %v6545_v2 }
 0x440   :  { %v6520_v55 = vpop.eup %6519 }
 0x441   :  { %v2735_v26 = vmul.f32 %v6520_v55, %v8183_v52 }
 0x44d   :  { %v2885_v46 = vpop.f32.mrf.mxu1 }
 0x44f   :  { %v6301_v53 = vpop.f32.mrf.mxu1 }
 0x455   :  { %v3037_v35 = vpop.f32.mrf.mxu1 }
 0x457   :  { %v6311_v0 = vpop.f32.mrf.mxu1 }
 0x45d   :  { %v3189_v1 = vpop.f32.mrf.mxu1 }
 0x45f   :  { %v6321_v5 = vpop.f32.mrf.mxu1 }
 0x463   :  { %v2809_v31 = vpop.f32.mrf.mxu0 }
 0x465   :  { %v6296_v7 = vpop.f32.mrf.mxu0 }
 0x46b   :  { %v2961_v54 = vpop.f32.mrf.mxu0 }
 0x46d   :  { %v6306_v32 = vpop.f32.mrf.mxu0 }
 0x46e   :  { %v5283_v32 = vld [vmem:[%s8362_s4] ss:$0 sm:$0xff]  ;;  %s6549_s4 = smov [#allocation2]  }
 0x46f   :  { %v3113_v63 = vpop.f32.mrf.mxu0  ;;  %s5184_s8 = sshll.u32 %s6549_s4, 4  ;;  %s5185_s8 = int_to_ptr.vmem [resolvable:$true] %s5184_s8 }
 0x470   :  { %s6523_s9 = scalar_lea.vmem %s5185_s8, 256  ;;  %p6528_p1 = scmp.lt.s32.totalorder %s5185_s8, %s5185_s8 }
 0x471   :  { %v6316_v59 = vpop.f32.mrf.mxu0  ;;  %p6524_p0 = scmp.ne.s32.totalorder %s5185_s8, %s6523_s9  ;;  %p6529_p2 = scmp.lt.s32.totalorder %s6523_s9, %s6523_s9 }
 0x472   :  { %v2704_v25 = vpop.xlane.xlu1 %2703 }
 0x473   :  { %6521 = vrcp.f32 %v2704_v25  ;;  %p6530_p3 = por %p6529_p2, %p6528_p1 }
 0x475   :  { %p6531_p4 = pnand %p6530_p3, %p6524_p0 }
 0x476   :  { %v3802_v8 = vpop.permute.xlu1 %3801 }
 0x477   :  { %6363 = vmatpush3.msra.mxu0 %v3802_v8 }
 0x478   :  { %6365 = vmatmul.mubr.msk.f32.vlgmr.msra.gmra.mxu0 %vm2560_vm2, %v2735_v26  ;;  %6372 = vmatprep.subr.mxu0 %v6545_v2 }
 0x479   :  { %6373 = vmatpush3.msk.msra.mxu0 %vm3964_vm3, %v3953_v33  ;;  %6374 = vmatprep.mubr.msk.f32.mxu0 %vm6546_vm0, %v6545_v2 }
 0x47a   :  { %6382 = vmatprep.subr.mxu0 %v6545_v2 }
 0x47c   :  { %6375 = vmatmul.mubr.msk.f32.vlgmr.msra.gmra.mxu0 %vm1330_vm1, %v2809_v31 }
 0x47d   :  { %6383 = vmatpush3.msk.msra.mxu0 %vm3964_vm3, %v3955_v42  ;;  %6384 = vmatprep.mubr.msk.f32.mxu0 %vm6546_vm0, %v6545_v2 }
 0x47e   :  { %6392 = vmatprep.subr.mxu0 %v6545_v2 }
 0x480   :  { %v6522_v48 = vpop.eup %6521  ;;  %6385 = vmatmul.mubr.msk.f32.vlgmr.msra.gmra.mxu0 %vm1330_vm1, %v2961_v54 }
 0x481   :  { %v2736_v52 = vmul.f32 %v6522_v48, %v8201_v24  ;;  %6393 = vmatpush3.msk.msra.mxu0 %vm3964_vm3, %v3957_v40  ;;  %6394 = vmatprep.mubr.msk.f32.mxu0 %vm6546_vm0, %v6545_v2 }
 0x482   :  { %6402 = vmatprep.subr.mxu0 %v6545_v2 }
 0x483   :  { %6370 = vmatmul.mubr.msk.f32.vlgmr.msra.gmra.mxu1 %vm2560_vm2, %v2736_v52 }
 0x484   :  { %6395 = vmatmul.mubr.msk.f32.vlgmr.msra.gmra.mxu0 %vm1330_vm1, %v3113_v63  ;;  %6378 = vmatpush3.msk.msra.mxu1 %vm3964_vm3, %v3954_v9 }
 0x485   :  { %6379 = vmatprep.mubr.msk.f32.mxu1 %vm6546_vm0, %v6545_v2  ;;  %6387 = vmatprep.subr.mxu1 %v6545_v2 }
 0x486   :  { %6403 = vmatpush3.msk.msra.mxu0 %vm3964_vm3, %v3959_v14  ;;  %6404 = vmatprep.mubr.msk.f32.mxu0 %vm6546_vm0, %v6545_v2 }
 0x487   :  { %6380 = vmatmul.mubr.msk.f32.vlgmr.msra.gmra.mxu1 %vm1330_vm1, %v2885_v46  ;;  %6412 = vmatprep.subr.mxu0 %v6545_v2 }
 0x488   :  { %6388 = vmatpush3.msk.msra.mxu1 %vm3964_vm3, %v3956_v15  ;;  %6389 = vmatprep.mubr.msk.f32.mxu1 %vm6546_vm0, %v6545_v2 }
 0x489   :  { %6397 = vmatprep.subr.mxu1 %v6545_v2 }
 0x48b   :  { %6390 = vmatmul.mubr.msk.f32.vlgmr.msra.gmra.mxu1 %vm1330_vm1, %v3037_v35 }
 0x48c   :  { %6398 = vmatpush3.msk.msra.mxu1 %vm3964_vm3, %v3958_v16  ;;  %6399 = vmatprep.mubr.msk.f32.mxu1 %vm6546_vm0, %v6545_v2 }
 0x48d   :  { %6407 = vmatprep.subr.mxu1 %v6545_v2 }
 0x48f   :  { %6400 = vmatmul.mubr.msk.f32.vlgmr.msra.gmra.mxu1 %vm1330_vm1, %v3189_v1 }
 0x490   :  { %6408 = vmatpush3.msk.msra.mxu1 %vm3964_vm3, %v3960_v18  ;;  %6409 = vmatprep.mubr.msk.f32.mxu1 %vm6546_vm0, %v6545_v2 }
 0x491   :  { %6417 = vmatprep.subr.mxu1 %v6545_v2 }
 0x4a7   :  { %v3265_v57 = vpop.f32.mrf.mxu0 }
 0x4a8   :  { %6405 = vmatmul.mubr.msk.f32.vlgmr.msra.gmra.mxu0 %vm1330_vm1, %v3265_v57 }
 0x4a9   :  { %v6326_v20 = vpop.f32.mrf.mxu0  ;;  %6413 = vmatpush3.msk.msra.mxu0 %vm3964_vm3, %v3953_v33  ;;  %6414 = vmatprep.mubr.msk.f32.mxu0 %vm6546_vm0, %v6545_v2 }
 0x4aa   :  { %6422 = vmatprep.subr.mxu0 %v6545_v2 }
 0x4ab   :  { %v3417_v21 = vpop.f32.mrf.mxu0 }
 0x4ac   :  { %6415 = vmatmul.mubr.msk.f32.vlgmr.msra.gmra.mxu0 %vm1330_vm1, %v3417_v21 }
 0x4ad   :  { %v6336_v10 = vpop.f32.mrf.mxu0  ;;  %6423 = vmatpush3.msk.msra.mxu0 %vm3964_vm3, %v3955_v42  ;;  %6424 = vmatprep.mubr.msk.f32.mxu0 %vm6546_vm0, %v6545_v2 }
 0x4ae   :  { %6432 = vmatprep.subr.mxu0 %v6545_v2 }
 0x4c3   :  { %v3569_v6 = vpop.f32.mrf.mxu0 }
 0x4c4   :  { %6425 = vmatmul.mubr.msk.f32.vlgmr.msra.gmra.mxu0 %vm1330_vm1, %v3569_v6 }
 0x4c5   :  { %v6346_v41 = vpop.f32.mrf.mxu0  ;;  %6433 = vmatpush3.msk.msra.mxu0 %vm3964_vm3, %v3957_v40  ;;  %6434 = vmatprep.mubr.msk.f32.mxu0 %vm6546_vm0, %v6545_v2 }
 0x4c6   :  { %6442 = vmatprep.subr.mxu0 %v6545_v2 }
 0x4e0   :  { %v3721_v50 = vpop.f32.mrf.mxu0 }
 0x4e1   :  { %6435 = vmatmul.mubr.msk.f32.vlgmr.msra.gmra.mxu0 %vm1330_vm1, %v3721_v50 }
 0x4e2   :  { %v6356_v22 = vpop.f32.mrf.mxu0  ;;  %6443 = vmatpush3.msk.msra.mxu0 %vm3964_vm3, %v3959_v14  ;;  %6444 = vmatprep.mubr.msk.f32.mxu0 %vm6546_vm0, %v6545_v2 }
 0x4ea   :  { %v3341_v23 = vpop.f32.mrf.mxu1 }
 0x4eb   :  { %6410 = vmatmul.mubr.msk.f32.vlgmr.msra.gmra.mxu1 %vm1330_vm1, %v3341_v23 }
 0x4ec   :  { %v6331_v24 = vpop.f32.mrf.mxu1  ;;  %6418 = vmatpush3.msk.msra.mxu1 %vm3964_vm3, %v3954_v9  ;;  %6419 = vmatprep.mubr.msk.f32.mxu1 %vm6546_vm0, %v6545_v2 }
 0x4ed   :  { %6427 = vmatprep.subr.mxu1 %v6545_v2 }
 0x4ee   :  { %v3493_v12 = vpop.f32.mrf.mxu1 }
 0x4ef   :  { %6420 = vmatmul.mubr.msk.f32.vlgmr.msra.gmra.mxu1 %vm1330_vm1, %v3493_v12 }
 0x4f0   :  { %v6341_v58 = vpop.f32.mrf.mxu1  ;;  %6428 = vmatpush3.msk.msra.mxu1 %vm3964_vm3, %v3956_v15  ;;  %6429 = vmatprep.mubr.msk.f32.mxu1 %vm6546_vm0, %v6545_v2 }
 0x4f1   :  { %6437 = vmatprep.subr.mxu1 %v6545_v2 }
 0x4f2   :  { %v3645_v56 = vpop.f32.mrf.mxu1 }
 0x4f3   :  { %6430 = vmatmul.mubr.msk.f32.vlgmr.msra.gmra.mxu1 %vm1330_vm1, %v3645_v56 }
 0x4f4   :  { %v6351_v62 = vpop.f32.mrf.mxu1  ;;  %6438 = vmatpush3.msk.msra.mxu1 %vm3964_vm3, %v3958_v16  ;;  %6439 = vmatprep.mubr.msk.f32.mxu1 %vm6546_vm0, %v6545_v2 }
 0x4f5   :  { %6447 = vmatprep.subr.mxu1 %v6545_v2 }
 0x4f6   :  { %v3797_v47 = vpop.f32.mrf.mxu1 }
 0x4f7   :  { %6440 = vmatmul.mubr.msk.f32.vlgmr.msra.gmra.mxu1 %vm1330_vm1, %v3797_v47 }
 0x4f8   :  { %v6361_v51 = vpop.f32.mrf.mxu1  ;;  %6448 = vmatpush3.msk.msra.mxu1 %vm3964_vm3, %v3960_v18  ;;  %6449 = vmatprep.mubr.msk.f32.mxu1 %vm6546_vm0, %v6545_v2 }
 0x538   :  { %v3873_v27 = vpop.f32.mrf.mxu0 }
 0x539   :  { %6445 = vmatmul.mubr.msk.f32.vlgmr.msra.gmra.mxu0 %vm1330_vm1, %v3873_v27 }
 0x53a   :  { %v6366_v3 = vpop.f32.mrf.mxu0 }
 0x53c   :  { %v4034_v34 = vpop.f32.mrf.mxu0 }
 0x53e   :  { %v6376_v28 = vpop.f32.mrf.mxu0 }
 0x540   :  { %v4186_v4 = vpop.f32.mrf.mxu0 }
 0x542   :  { %v6386_v30 = vpop.f32.mrf.mxu0 }
 0x543   :  { %v3949_v36 = vpop.f32.mrf.mxu1 }
 0x544   :  { %v4338_v11 = vpop.f32.mrf.mxu0  ;;  %6450 = vmatmul.mubr.msk.f32.vlgmr.msra.gmra.mxu1 %vm1330_vm1, %v3949_v36 }
 0x545   :  { %v6371_v43 = vpop.f32.mrf.mxu1 }
 0x546   :  { %v6396_v17 = vpop.f32.mrf.mxu0 }
 0x547   :  { %v4110_v49 = vpop.f32.mrf.mxu1 }
 0x548   :  { %v5154_v29 = vadd.f32 %v4110_v49, %v4034_v34 }
 0x549   :  { %v6381_v37 = vpop.f32.mrf.mxu1 }
 0x54a   :  { %v5155_v13 = vadd.f32 %v5154_v29, %v4186_v4 }
 0x54b   :  { %v4262_v60 = vpop.f32.mrf.mxu1 }
 0x54c   :  { %v5156_v2 = vadd.f32 %v5155_v13, %v4262_v60 }
 0x54d   :  { %v6391_v39 = vpop.f32.mrf.mxu1 }
 0x54e   :  { %v5157_v38 = vadd.f32 %v5156_v2, %v4338_v11 }
 0x54f   :  { %v4414_v44 = vpop.f32.mrf.mxu1 }
 0x550   :  { %v5158_v45 = vadd.f32 %v5157_v38, %v4414_v44 }
 0x551   :  { %v6401_v61 = vpop.f32.mrf.mxu1 }
 0x568   :  { %v4490_v19 = vpop.f32.mrf.mxu0 }
 0x569   :  { %v5159_v46 = vadd.f32 %v5158_v45, %v4490_v19 }
 0x56a   :  { %v6406_v53 = vpop.f32.mrf.mxu0 }
 0x56c   :  { %v4639_v35 = vpop.f32.mrf.mxu0 }
 0x56e   :  { %v6416_v0 = vpop.f32.mrf.mxu0 }
 0x584   :  { %v4785_v1 = vpop.f32.mrf.mxu0 }
 0x586   :  { %v6426_v5 = vpop.f32.mrf.mxu0 }
 0x5a1   :  { %v4931_v31 = vpop.f32.mrf.mxu0 }
 0x5a3   :  { %v6436_v7 = vpop.f32.mrf.mxu0 }
 0x5ab   :  { %v4566_v54 = vpop.f32.mrf.mxu1 }
 0x5ac   :  { %v5160_v63 = vadd.f32 %v5159_v46, %v4566_v54 }
 0x5ad   :  { %v6411_v59 = vpop.f32.mrf.mxu1 }
 0x5ae   :  { %v5175_v25 = vadd.f32 %v5283_v32, %v5160_v63 }
 0x5af   :  { %v4712_v55 = vpop.f32.mrf.mxu1 }
 0x5b0   :  { %5177 = vst [vmem:[#allocation2] sm:$0xff] %v5175_v25  ;;  %v5161_v8 = vadd.f32 %v4712_v55, %v4639_v35 }
 0x5b1   :  { %v6421_v26 = vpop.f32.mrf.mxu1 }
 0x5b2   :  { %v5162_v33 = vadd.f32 %v5161_v8, %v4785_v1 }
 0x5b3   :  { %v4858_v42 = vpop.f32.mrf.mxu1 }
 0x5b4   :  { %v5163_v40 = vadd.f32 %v5162_v33, %v4858_v42 }
 0x5b5   :  { %v6431_v48 = vpop.f32.mrf.mxu1 }
 0x5b6   :  { %v5164_v52 = vadd.f32 %v5163_v40, %v4931_v31 }
 0x5b7   :  { %v5004_v9 = vpop.f32.mrf.mxu1 }
 0x5b8   :  { %v5165_v14 = vadd.f32 %v5164_v52, %v5004_v9 }
 0x5b9   :  { %v6441_v15 = vpop.f32.mrf.mxu1 }
 0x5f9   :  { %v5077_v16 = vpop.f32.mrf.mxu0 }
 0x5fa   :  { %v5166_v57 = vadd.f32 %v5165_v14, %v5077_v16 }
 0x5fb   :  { %v6446_v18 = vpop.f32.mrf.mxu0 }
 0x604   :  { %v5150_v20 = vpop.f32.mrf.mxu1 }
 0x605   :  { %v5167_v21 = vadd.f32 %v5166_v57, %v5150_v20 }
 0x606   :  { %v6451_v10 = vpop.f32.mrf.mxu1 }
 0x607   :  { %v5176_v6 = vadd.f32 %v5283_v32, %v5167_v21 }
 0x609   :  { %5178 = vst [vmem:[#allocation2 + $0x8] sm:$0xff] %v5176_v6 }
 0x60a   :  { %6534 = shalt.err (!%p6531_p4)
}
 0x60b   :  { %s6550_s10 = smov 128   ;;  %s6551_s11 = smov 8  }
 0x60c   :  { %5190 = dma.vmem_to_hbm [thread:$0]  %s5185_s8, 256, %s8363_s5, [#allocation3], %s6550_s10, %s6550_s10, %s6551_s11  }
 0x60d   :  { %6543 = dma.done.wait [#allocation3], 256  }
 0x60e   :  { %6544 = vsyncadd [#allocation3], 4294967040 }
 0x60f   :  { %5194 = vsyncpa [#allocation3], 1 }

</bundles_post_ra>
